<compile_context>
chip_gen: v6e
topology: v6e:2x2x1
jax: 0.10.0
libtpu: 0.0.40
codegen_flags: <defaults>
</compile_context>

<pallas_src>
import functools

import jax
import jax.numpy as jnp
from jax.experimental import pallas as pl
from jax.experimental.pallas import tpu as pltpu


def _sigmoid_1eup(x):
    # sigmoid(x) == 0.5 * tanh(0.5 * x) + 0.5 : a single EUP push (tanh) instead
    # of exp + reciprocal on the latency-bound recurrent chain.
    return 0.5 * jnp.tanh(0.5 * x) + 0.5


# ----------------------------- Pallas kernel --------------------------------
def _lstm_fused_kernel(x_ref, h0_ref, c0_ref, wih_ref, whh_ref, b_ref,
                       wfc_ref, bfc_ref,
                       out_ref, hT_ref, cT_ref,
                       xp_ref, hs_ref, *, seq_len, batch_p, hidden):
    """Whole-sequence LSTM + output projection, single invocation.

    x_ref   : (T*Bp, E)  bf16 time-major embedded inputs (row = t*Bp + b)
    h0_ref  : (Bp, H)    f32  initial hidden state (batch-padded)
    c0_ref  : (Bp, H)    f32  initial cell state
    wih_ref : (E, 4H)    bf16 fused input weights, gate columns [i|f|g|o]
    whh_ref : (H, 4H)    bf16 fused recurrent weights
    b_ref   : (1, 4H)    f32  fused bias (b_ih + b_hh)
    wfc_ref : (H, V)     bf16 fc weight (transposed)
    bfc_ref : (1, V)     f32  fc bias
    out_ref : (T*Bp, V)  f32  per-step logits (time-major rows)
    xp_ref  : (T*Bp, 4H) f32 scratch — hoisted input projections (+ bias)
    hs_ref  : (T*Bp, H)  f32 scratch — collected hidden states
    """
    T, Bp, H = seq_len, batch_p, hidden

    # ---- hoisted input projection: ONE wide matmul, bias folded in.
    xp_ref[...] = (jnp.dot(x_ref[...], wih_ref[...],
                           preferred_element_type=jnp.float32) + b_ref[...])

    # ---- sequential recurrence: one (Bp, H) x (H, 4H) matmul per step.
    # TODO(synk): W_hh could be held stationary in the MXU across steps via
    # pltpu.matmul_push_rhs / matmul_acc_lhs / matmul_pop; kept jnp.dot for
    # portability across v5e/v6e/v7x staging-register layouts.
    whh = whh_ref[...]
    h = h0_ref[...]                      # f32
    c = c0_ref[...]                      # f32
    # TODO(synk): switch to lax.fori_loop(unroll=k) if T grows beyond ~16
    # (static unroll does not bound vreg live ranges).
    for t in range(T):
        r0 = t * Bp                      # static, 8-sublane-aligned offset
        pre = xp_ref[r0:r0 + Bp, :] + jnp.dot(
            h.astype(whh.dtype), whh, preferred_element_type=jnp.float32)
        i_g = _sigmoid_1eup(pre[:, 0 * H:1 * H])   # lane-aligned gate slices
        f_g = _sigmoid_1eup(pre[:, 1 * H:2 * H])
        g_g = jnp.tanh(pre[:, 2 * H:3 * H])
        o_g = _sigmoid_1eup(pre[:, 3 * H:4 * H])
        c = f_g * c + i_g * g_g                    # f32 cell math
        h = o_g * jnp.tanh(c)
        hs_ref[r0:r0 + Bp, :] = h                  # f32, tile-aligned store

    # ---- hoisted fc head: one (T*Bp, H) x (H, V) matmul, lane-dense store.
    out_ref[...] = (jnp.dot(hs_ref[...].astype(wfc_ref.dtype), wfc_ref[...],
                            preferred_element_type=jnp.float32)
                    + bfc_ref[...]).astype(out_ref.dtype)
    hT_ref[...] = h
    cT_ref[...] = c


def _lstm_pallas(x_slab, h0, c0, wih_f, whh_f, b_f, wfc_t, bfc,
                 *, seq_len, batch_p):
    """x_slab: (T*Bp, E) bf16 time-major.  Returns (logits (T*Bp,V), hT, cT)."""
    TBp = x_slab.shape[0]
    H = h0.shape[1]
    H4 = wih_f.shape[1]
    V = wfc_t.shape[1]

    kernel = functools.partial(_lstm_fused_kernel, seq_len=seq_len,
                               batch_p=batch_p, hidden=H)
    vmem = lambda: pl.BlockSpec(memory_space=pltpu.MemorySpace.VMEM)

    # TODO(synk): tile the fc head over V (its own "parallel" grid axis) before
    # scaling to a real vocabulary; whole-array VMEM residency is fine at these
    # toy shapes on v5e/v6e/v7x.
    return pl.pallas_call(
        kernel,
        out_shape=(
            jax.ShapeDtypeStruct((TBp, V), jnp.float32),
            jax.ShapeDtypeStruct((batch_p, H), jnp.float32),
            jax.ShapeDtypeStruct((batch_p, H), jnp.float32),
        ),
        in_specs=[vmem() for _ in range(8)],
        out_specs=(vmem(), vmem(), vmem()),
        scratch_shapes=[
            pltpu.VMEM((TBp, H4), jnp.float32),   # hoisted input projections
            pltpu.VMEM((TBp, H), jnp.float32),    # hidden-state slab
        ],
    )(x_slab, h0, c0, wih_f, whh_f, b_f, wfc_t, bfc)


# ------------------------------ Params ---------------------------------------
def init_params(key, vocab_length, embedding_length, n_hidden):
    """PyTorch-layout parameters (as nn.Embedding / nn.LSTM / nn.Linear)."""
    ks = jax.random.split(key, 8)
    u = lambda k, shape, s: jax.random.uniform(k, shape, jnp.float32, -s, s)
    s_lstm = 1.0 / jnp.sqrt(n_hidden)
    s_fc = 1.0 / jnp.sqrt(n_hidden)
    return {
        "embedding": jax.random.normal(ks[0], (vocab_length, embedding_length),
                                       jnp.float32),
        "w_ih": u(ks[1], (4 * n_hidden, embedding_length), s_lstm),
        "w_hh": u(ks[2], (4 * n_hidden, n_hidden), s_lstm),
        "b_ih": u(ks[3], (4 * n_hidden,), s_lstm),
        "b_hh": u(ks[4], (4 * n_hidden,), s_lstm),
        "w_fc": u(ks[5], (vocab_length, n_hidden), s_fc),
        "b_fc": u(ks[6], (vocab_length,), s_fc),
    }


def prepare_kernel_params(params):
    """One-time re-layout (outside the per-call jit): gate-fused, pre-transposed
    bf16 MXU operands and pre-summed f32 bias."""
    return {
        "embedding": params["embedding"].astype(jnp.bfloat16),        # (V, E)
        "wih_f": params["w_ih"].T.astype(jnp.bfloat16),                # (E, 4H)
        "whh_f": params["w_hh"].T.astype(jnp.bfloat16),                # (H, 4H)
        "b_f": (params["b_ih"] + params["b_hh"])[None, :],             # (1, 4H)
        "wfc_t": params["w_fc"].T.astype(jnp.bfloat16),                # (H, V)
        "bfc": params["b_fc"][None, :],                                # (1, V)
    }


# ------------------------------ Model wrapper ---------------------------------
@jax.jit
def lstm_model_forward(kparams, tokens, hidden):
    """Matches LSTMModel.forward: tokens (B, T) int32, hidden = (h, c) each
    (n_layers=1, B, H).  Returns (out (B*T, V), (h, c))."""
    h0, c0 = hidden
    B, T = tokens.shape
    Bp = ((B + 7) // 8) * 8          # pad batch rows to the 8-sublane tile

    # TODO(synk): embedding lookup is a dynamic gather; kept in plain JAX glue
    # (scalar-prefetch row-gather in the kernel would save one HBM round-trip).
    # Gather directly in time-major order to avoid a (B, T, E) transpose.
    x_tbe = kparams["embedding"][tokens.T]               # (T, B, E) bf16
    if Bp != B:
        x_tbe = jnp.pad(x_tbe, ((0, 0), (0, Bp - B), (0, 0)))
        h0p = jnp.pad(h0[0], ((0, Bp - B), (0, 0)))
        c0p = jnp.pad(c0[0], ((0, Bp - B), (0, 0)))
    else:
        h0p, c0p = h0[0], c0[0]
    x_slab = x_tbe.reshape(T * Bp, -1)                   # (T*Bp, E)

    logits_tb, hT, cT = _lstm_pallas(
        x_slab, h0p, c0p,
        kparams["wih_f"], kparams["whh_f"], kparams["b_f"],
        kparams["wfc_t"], kparams["bfc"],
        seq_len=T, batch_p=Bp)

    V = logits_tb.shape[-1]
    out = (logits_tb.reshape(T, Bp, V)[:, :B, :]
           .transpose(1, 0, 2).reshape(B * T, V))
    return out, (hT[:B][None], cT[:B][None])


# ------------------------------ Reference (JAX, f32) --------------------------
def _reference_forward(params, tokens, hidden):
    h, c = hidden[0][0], hidden[1][0]
    embed = params["embedding"][tokens]              # (B, T, E)
    H = h.shape[-1]
    outs = []
    for t in range(tokens.shape[1]):
        x_t = embed[:, t, :]
        gates = (x_t @ params["w_ih"].T + h @ params["w_hh"].T
                 + params["b_ih"] + params["b_hh"])
        i = jax.nn.sigmoid(gates[:, :H])
        f = jax.nn.sigmoid(gates[:, H:2 * H])
        g = jnp.tanh(gates[:, 2 * H:3 * H])
        o = jax.nn.sigmoid(gates[:, 3 * H:])
        c = f * c + i * g
        h = o * jnp.tanh(c)
        outs.append(h)
    r_out = jnp.stack(outs, axis=1)                  # (B, T, H)
    out = r_out.reshape(-1, H) @ params["w_fc"].T + params["b_fc"]
    return out, (h[None], c[None])


# ----------------------------------- main -------------------------------------
if __name__ == "__main__":
    # Small shapes consistent with the module's forward (lane-friendly H, V).
    B, T = 4, 8          # batch, bptt/sequence length
    E = 32               # embedding_length
    H = 128              # n_hidden
    V = 128              # vocab_length

    key = jax.random.PRNGKey(0)
    k_par, k_tok = jax.random.split(key)
    params = init_params(k_par, V, E, H)
    kparams = prepare_kernel_params(params)          # one-time re-layout
    tokens = jax.random.randint(k_tok, (B, T), 0, V, dtype=jnp.int32)

    # init_hidden(batch_size): zeros (n_layers, B, H)
    hidden = (jnp.zeros((1, B, H), jnp.float32), jnp.zeros((1, B, H), jnp.float32))

    out, (hT, cT) = lstm_model_forward(kparams, tokens, hidden)
    jax.block_until_ready(out)

    ref_out, (ref_h, ref_c) = _reference_forward(params, tokens, hidden)
    assert out.shape == (B * T, V) and hT.shape == (1, B, H) and cT.shape == (1, B, H)
    # Tolerance accounts for bf16 MXU operands (f32 accumulation / cell math).
    assert jnp.allclose(out, ref_out, atol=2e-2, rtol=2e-2)
    assert jnp.allclose(hT, ref_h, atol=2e-2, rtol=2e-2)
    assert jnp.allclose(cT, ref_c, atol=2e-2, rtol=2e-2)

    print("KERNEL_OK")
</pallas_src>

<mosaic_0001>
module attributes {stable_mosaic.version = 11 : i64} {
  func.func @_lstm_fused_kernel(%arg0: memref<64x32xbf16, #tpu.memory_space<vmem>>, %arg1: memref<8x128xf32, #tpu.memory_space<vmem>>, %arg2: memref<8x128xf32, #tpu.memory_space<vmem>>, %arg3: memref<32x512xbf16, #tpu.memory_space<vmem>>, %arg4: memref<128x512xbf16, #tpu.memory_space<vmem>>, %arg5: memref<1x512xf32, #tpu.memory_space<vmem>>, %arg6: memref<128x128xbf16, #tpu.memory_space<vmem>>, %arg7: memref<1x128xf32, #tpu.memory_space<vmem>>, %arg8: memref<64x128xf32, #tpu.memory_space<vmem>>, %arg9: memref<8x128xf32, #tpu.memory_space<vmem>>, %arg10: memref<8x128xf32, #tpu.memory_space<vmem>>, %arg11: memref<64x512xf32, #tpu.memory_space<vmem>>, %arg12: memref<64x128xf32, #tpu.memory_space<vmem>>) attributes {dimension_semantics = [], scalar_prefetch = 0 : i64, scratch_operands = 2 : i64, tpu.core_type = #tpu.core_type<tc>} {
    %c0 = arith.constant 0 : index
    %c0_0 = arith.constant 0 : index
    %0 = vector.load %arg0[%c0, %c0_0] : memref<64x32xbf16, #tpu.memory_space<vmem>>, vector<64x32xbf16>
    %c0_1 = arith.constant 0 : index
    %c0_2 = arith.constant 0 : index
    %1 = vector.load %arg3[%c0_1, %c0_2] : memref<32x512xbf16, #tpu.memory_space<vmem>>, vector<32x512xbf16>
    %cst = arith.constant dense<0.000000e+00> : vector<64x512xf32>
    %2 = tpu.matmul %0, %1, %cst {dimension_numbers = #tpu.dot_dimension_numbers<[1], [0], [0], [1], [0, 0, 1, 1], [], []>} : vector<64x32xbf16>, vector<32x512xbf16>, vector<64x512xf32> -> vector<64x512xf32>
    %c0_3 = arith.constant 0 : index
    %c0_4 = arith.constant 0 : index
    %3 = vector.load %arg5[%c0_3, %c0_4] : memref<1x512xf32, #tpu.memory_space<vmem>>, vector<1x512xf32>
    %4 = vector.broadcast %3 : vector<1x512xf32> to vector<64x512xf32>
    %5 = arith.addf %2, %4 : vector<64x512xf32>
    %c0_5 = arith.constant 0 : index
    %c0_6 = arith.constant 0 : index
    %6 = vector.load %arg11[%c0_5, %c0_6] : memref<64x512xf32, #tpu.memory_space<vmem>>, vector<64x512xf32>
    tpu.vector_store %arg11[%c0_5, %c0_6], %5 {strides = array<i32>} : memref<64x512xf32, #tpu.memory_space<vmem>>, vector<64x512xf32>,
    %c0_7 = arith.constant 0 : index
    %c0_8 = arith.constant 0 : index
    %7 = vector.load %arg4[%c0_7, %c0_8] : memref<128x512xbf16, #tpu.memory_space<vmem>>, vector<128x512xbf16>
    %c0_9 = arith.constant 0 : index
    %c0_10 = arith.constant 0 : index
    %8 = vector.load %arg1[%c0_9, %c0_10] : memref<8x128xf32, #tpu.memory_space<vmem>>, vector<8x128xf32>
    %c0_11 = arith.constant 0 : index
    %c0_12 = arith.constant 0 : index
    %9 = vector.load %arg2[%c0_11, %c0_12] : memref<8x128xf32, #tpu.memory_space<vmem>>, vector<8x128xf32>
    %c0_13 = arith.constant 0 : index
    %c0_14 = arith.constant 0 : index
    %10 = vector.load %arg11[%c0_13, %c0_14] : memref<64x512xf32, #tpu.memory_space<vmem>>, vector<8x512xf32>
    %11 = arith.truncf %8 : vector<8x128xf32> to vector<8x128xbf16>
    %cst_15 = arith.constant dense<0.000000e+00> : vector<8x512xf32>
    %12 = tpu.matmul %11, %7, %cst_15 {dimension_numbers = #tpu.dot_dimension_numbers<[1], [0], [0], [1], [0, 0, 1, 1], [], []>} : vector<8x128xbf16>, vector<128x512xbf16>, vector<8x512xf32> -> vector<8x512xf32>
    %13 = arith.addf %10, %12 : vector<8x512xf32>
    %14 = vector.extract_strided_slice %13 {offsets = [0, 0], sizes = [8, 128], strides = [1, 1]} : vector<8x512xf32> to vector<8x128xf32>
    %cst_16 = arith.constant 5.000000e-01 : f32
    %15 = vector.broadcast %cst_16 : f32 to vector<8x128xf32>
    %16 = arith.mulf %15, %14 : vector<8x128xf32>
    %17 = math.tanh %16 : vector<8x128xf32>
    %cst_17 = arith.constant 5.000000e-01 : f32
    %18 = vector.broadcast %cst_17 : f32 to vector<8x128xf32>
    %19 = arith.mulf %18, %17 : vector<8x128xf32>
    %cst_18 = arith.constant 5.000000e-01 : f32
    %20 = vector.broadcast %cst_18 : f32 to vector<8x128xf32>
    %21 = arith.addf %19, %20 : vector<8x128xf32>
    %22 = vector.extract_strided_slice %13 {offsets = [0, 128], sizes = [8, 128], strides = [1, 1]} : vector<8x512xf32> to vector<8x128xf32>
    %cst_19 = arith.constant 5.000000e-01 : f32
    %23 = vector.broadcast %cst_19 : f32 to vector<8x128xf32>
    %24 = arith.mulf %23, %22 : vector<8x128xf32>
    %25 = math.tanh %24 : vector<8x128xf32>
    %cst_20 = arith.constant 5.000000e-01 : f32
    %26 = vector.broadcast %cst_20 : f32 to vector<8x128xf32>
    %27 = arith.mulf %26, %25 : vector<8x128xf32>
    %cst_21 = arith.constant 5.000000e-01 : f32
    %28 = vector.broadcast %cst_21 : f32 to vector<8x128xf32>
    %29 = arith.addf %27, %28 : vector<8x128xf32>
    %30 = vector.extract_strided_slice %13 {offsets = [0, 256], sizes = [8, 128], strides = [1, 1]} : vector<8x512xf32> to vector<8x128xf32>
    %31 = math.tanh %30 : vector<8x128xf32>
    %32 = vector.extract_strided_slice %13 {offsets = [0, 384], sizes = [8, 128], strides = [1, 1]} : vector<8x512xf32> to vector<8x128xf32>
    %cst_22 = arith.constant 5.000000e-01 : f32
    %33 = vector.broadcast %cst_22 : f32 to vector<8x128xf32>
    %34 = arith.mulf %33, %32 : vector<8x128xf32>
    %35 = math.tanh %34 : vector<8x128xf32>
    %cst_23 = arith.constant 5.000000e-01 : f32
    %36 = vector.broadcast %cst_23 : f32 to vector<8x128xf32>
    %37 = arith.mulf %36, %35 : vector<8x128xf32>
    %cst_24 = arith.constant 5.000000e-01 : f32
    %38 = vector.broadcast %cst_24 : f32 to vector<8x128xf32>
    %39 = arith.addf %37, %38 : vector<8x128xf32>
    %40 = arith.mulf %29, %9 : vector<8x128xf32>
    %41 = arith.mulf %21, %31 : vector<8x128xf32>
    %42 = arith.addf %40, %41 : vector<8x128xf32>
    %43 = math.tanh %42 : vector<8x128xf32>
    %44 = arith.mulf %39, %43 : vector<8x128xf32>
    %c0_25 = arith.constant 0 : index
    %c0_26 = arith.constant 0 : index
    %45 = vector.load %arg12[%c0_25, %c0_26] : memref<64x128xf32, #tpu.memory_space<vmem>>, vector<8x128xf32>
    tpu.vector_store %arg12[%c0_25, %c0_26], %44 {strides = array<i32>} : memref<64x128xf32, #tpu.memory_space<vmem>>, vector<8x128xf32>,
    %c8 = arith.constant 8 : index
    %c0_27 = arith.constant 0 : index
    %46 = vector.load %arg11[%c8, %c0_27] : memref<64x512xf32, #tpu.memory_space<vmem>>, vector<8x512xf32>
    %47 = arith.truncf %44 : vector<8x128xf32> to vector<8x128xbf16>
    %cst_28 = arith.constant dense<0.000000e+00> : vector<8x512xf32>
    %48 = tpu.matmul %47, %7, %cst_28 {dimension_numbers = #tpu.dot_dimension_numbers<[1], [0], [0], [1], [0, 0, 1, 1], [], []>} : vector<8x128xbf16>, vector<128x512xbf16>, vector<8x512xf32> -> vector<8x512xf32>
    %49 = arith.addf %46, %48 : vector<8x512xf32>
    %50 = vector.extract_strided_slice %49 {offsets = [0, 0], sizes = [8, 128], strides = [1, 1]} : vector<8x512xf32> to vector<8x128xf32>
    %cst_29 = arith.constant 5.000000e-01 : f32
    %51 = vector.broadcast %cst_29 : f32 to vector<8x128xf32>
    %52 = arith.mulf %51, %50 : vector<8x128xf32>
    %53 = math.tanh %52 : vector<8x128xf32>
    %cst_30 = arith.constant 5.000000e-01 : f32
    %54 = vector.broadcast %cst_30 : f32 to vector<8x128xf32>
    %55 = arith.mulf %54, %53 : vector<8x128xf32>
    %cst_31 = arith.constant 5.000000e-01 : f32
    %56 = vector.broadcast %cst_31 : f32 to vector<8x128xf32>
    %57 = arith.addf %55, %56 : vector<8x128xf32>
    %58 = vector.extract_strided_slice %49 {offsets = [0, 128], sizes = [8, 128], strides = [1, 1]} : vector<8x512xf32> to vector<8x128xf32>
    %cst_32 = arith.constant 5.000000e-01 : f32
    %59 = vector.broadcast %cst_32 : f32 to vector<8x128xf32>
    %60 = arith.mulf %59, %58 : vector<8x128xf32>
    %61 = math.tanh %60 : vector<8x128xf32>
    %cst_33 = arith.constant 5.000000e-01 : f32
    %62 = vector.broadcast %cst_33 : f32 to vector<8x128xf32>
    %63 = arith.mulf %62, %61 : vector<8x128xf32>
    %cst_34 = arith.constant 5.000000e-01 : f32
    %64 = vector.broadcast %cst_34 : f32 to vector<8x128xf32>
    %65 = arith.addf %63, %64 : vector<8x128xf32>
    %66 = vector.extract_strided_slice %49 {offsets = [0, 256], sizes = [8, 128], strides = [1, 1]} : vector<8x512xf32> to vector<8x128xf32>
    %67 = math.tanh %66 : vector<8x128xf32>
    %68 = vector.extract_strided_slice %49 {offsets = [0, 384], sizes = [8, 128], strides = [1, 1]} : vector<8x512xf32> to vector<8x128xf32>
    %cst_35 = arith.constant 5.000000e-01 : f32
    %69 = vector.broadcast %cst_35 : f32 to vector<8x128xf32>
    %70 = arith.mulf %69, %68 : vector<8x128xf32>
    %71 = math.tanh %70 : vector<8x128xf32>
    %cst_36 = arith.constant 5.000000e-01 : f32
    %72 = vector.broadcast %cst_36 : f32 to vector<8x128xf32>
    %73 = arith.mulf %72, %71 : vector<8x128xf32>
    %cst_37 = arith.constant 5.000000e-01 : f32
    %74 = vector.broadcast %cst_37 : f32 to vector<8x128xf32>
    %75 = arith.addf %73, %74 : vector<8x128xf32>
    %76 = arith.mulf %65, %42 : vector<8x128xf32>
    %77 = arith.mulf %57, %67 : vector<8x128xf32>
    %78 = arith.addf %76, %77 : vector<8x128xf32>
    %79 = math.tanh %78 : vector<8x128xf32>
    %80 = arith.mulf %75, %79 : vector<8x128xf32>
    %c8_38 = arith.constant 8 : index
    %c0_39 = arith.constant 0 : index
    %81 = vector.load %arg12[%c8_38, %c0_39] : memref<64x128xf32, #tpu.memory_space<vmem>>, vector<8x128xf32>
    tpu.vector_store %arg12[%c8_38, %c0_39], %80 {strides = array<i32>} : memref<64x128xf32, #tpu.memory_space<vmem>>, vector<8x128xf32>,
    %c16 = arith.constant 16 : index
    %c0_40 = arith.constant 0 : index
    %82 = vector.load %arg11[%c16, %c0_40] : memref<64x512xf32, #tpu.memory_space<vmem>>, vector<8x512xf32>
    %83 = arith.truncf %80 : vector<8x128xf32> to vector<8x128xbf16>
    %cst_41 = arith.constant dense<0.000000e+00> : vector<8x512xf32>
    %84 = tpu.matmul %83, %7, %cst_41 {dimension_numbers = #tpu.dot_dimension_numbers<[1], [0], [0], [1], [0, 0, 1, 1], [], []>} : vector<8x128xbf16>, vector<128x512xbf16>, vector<8x512xf32> -> vector<8x512xf32>
    %85 = arith.addf %82, %84 : vector<8x512xf32>
    %86 = vector.extract_strided_slice %85 {offsets = [0, 0], sizes = [8, 128], strides = [1, 1]} : vector<8x512xf32> to vector<8x128xf32>
    %cst_42 = arith.constant 5.000000e-01 : f32
    %87 = vector.broadcast %cst_42 : f32 to vector<8x128xf32>
    %88 = arith.mulf %87, %86 : vector<8x128xf32>
    %89 = math.tanh %88 : vector<8x128xf32>
    %cst_43 = arith.constant 5.000000e-01 : f32
    %90 = vector.broadcast %cst_43 : f32 to vector<8x128xf32>
    %91 = arith.mulf %90, %89 : vector<8x128xf32>
    %cst_44 = arith.constant 5.000000e-01 : f32
    %92 = vector.broadcast %cst_44 : f32 to vector<8x128xf32>
    %93 = arith.addf %91, %92 : vector<8x128xf32>
    %94 = vector.extract_strided_slice %85 {offsets = [0, 128], sizes = [8, 128], strides = [1, 1]} : vector<8x512xf32> to vector<8x128xf32>
    %cst_45 = arith.constant 5.000000e-01 : f32
    %95 = vector.broadcast %cst_45 : f32 to vector<8x128xf32>
    %96 = arith.mulf %95, %94 : vector<8x128xf32>
    %97 = math.tanh %96 : vector<8x128xf32>
    %cst_46 = arith.constant 5.000000e-01 : f32
    %98 = vector.broadcast %cst_46 : f32 to vector<8x128xf32>
    %99 = arith.mulf %98, %97 : vector<8x128xf32>
    %cst_47 = arith.constant 5.000000e-01 : f32
    %100 = vector.broadcast %cst_47 : f32 to vector<8x128xf32>
    %101 = arith.addf %99, %100 : vector<8x128xf32>
    %102 = vector.extract_strided_slice %85 {offsets = [0, 256], sizes = [8, 128], strides = [1, 1]} : vector<8x512xf32> to vector<8x128xf32>
    %103 = math.tanh %102 : vector<8x128xf32>
    %104 = vector.extract_strided_slice %85 {offsets = [0, 384], sizes = [8, 128], strides = [1, 1]} : vector<8x512xf32> to vector<8x128xf32>
    %cst_48 = arith.constant 5.000000e-01 : f32
    %105 = vector.broadcast %cst_48 : f32 to vector<8x128xf32>
    %106 = arith.mulf %105, %104 : vector<8x128xf32>
    %107 = math.tanh %106 : vector<8x128xf32>
    %cst_49 = arith.constant 5.000000e-01 : f32
    %108 = vector.broadcast %cst_49 : f32 to vector<8x128xf32>
    %109 = arith.mulf %108, %107 : vector<8x128xf32>
    %cst_50 = arith.constant 5.000000e-01 : f32
    %110 = vector.broadcast %cst_50 : f32 to vector<8x128xf32>
    %111 = arith.addf %109, %110 : vector<8x128xf32>
    %112 = arith.mulf %101, %78 : vector<8x128xf32>
    %113 = arith.mulf %93, %103 : vector<8x128xf32>
    %114 = arith.addf %112, %113 : vector<8x128xf32>
    %115 = math.tanh %114 : vector<8x128xf32>
    %116 = arith.mulf %111, %115 : vector<8x128xf32>
    %c16_51 = arith.constant 16 : index
    %c0_52 = arith.constant 0 : index
    %117 = vector.load %arg12[%c16_51, %c0_52] : memref<64x128xf32, #tpu.memory_space<vmem>>, vector<8x128xf32>
    tpu.vector_store %arg12[%c16_51, %c0_52], %116 {strides = array<i32>} : memref<64x128xf32, #tpu.memory_space<vmem>>, vector<8x128xf32>,
    %c24 = arith.constant 24 : index
    %c0_53 = arith.constant 0 : index
    %118 = vector.load %arg11[%c24, %c0_53] : memref<64x512xf32, #tpu.memory_space<vmem>>, vector<8x512xf32>
    %119 = arith.truncf %116 : vector<8x128xf32> to vector<8x128xbf16>
    %cst_54 = arith.constant dense<0.000000e+00> : vector<8x512xf32>
    %120 = tpu.matmul %119, %7, %cst_54 {dimension_numbers = #tpu.dot_dimension_numbers<[1], [0], [0], [1], [0, 0, 1, 1], [], []>} : vector<8x128xbf16>, vector<128x512xbf16>, vector<8x512xf32> -> vector<8x512xf32>
    %121 = arith.addf %118, %120 : vector<8x512xf32>
    %122 = vector.extract_strided_slice %121 {offsets = [0, 0], sizes = [8, 128], strides = [1, 1]} : vector<8x512xf32> to vector<8x128xf32>
    %cst_55 = arith.constant 5.000000e-01 : f32
    %123 = vector.broadcast %cst_55 : f32 to vector<8x128xf32>
    %124 = arith.mulf %123, %122 : vector<8x128xf32>
    %125 = math.tanh %124 : vector<8x128xf32>
    %cst_56 = arith.constant 5.000000e-01 : f32
    %126 = vector.broadcast %cst_56 : f32 to vector<8x128xf32>
    %127 = arith.mulf %126, %125 : vector<8x128xf32>
    %cst_57 = arith.constant 5.000000e-01 : f32
    %128 = vector.broadcast %cst_57 : f32 to vector<8x128xf32>
    %129 = arith.addf %127, %128 : vector<8x128xf32>
    %130 = vector.extract_strided_slice %121 {offsets = [0, 128], sizes = [8, 128], strides = [1, 1]} : vector<8x512xf32> to vector<8x128xf32>
    %cst_58 = arith.constant 5.000000e-01 : f32
    %131 = vector.broadcast %cst_58 : f32 to vector<8x128xf32>
    %132 = arith.mulf %131, %130 : vector<8x128xf32>
    %133 = math.tanh %132 : vector<8x128xf32>
    %cst_59 = arith.constant 5.000000e-01 : f32
    %134 = vector.broadcast %cst_59 : f32 to vector<8x128xf32>
    %135 = arith.mulf %134, %133 : vector<8x128xf32>
    %cst_60 = arith.constant 5.000000e-01 : f32
    %136 = vector.broadcast %cst_60 : f32 to vector<8x128xf32>
    %137 = arith.addf %135, %136 : vector<8x128xf32>
    %138 = vector.extract_strided_slice %121 {offsets = [0, 256], sizes = [8, 128], strides = [1, 1]} : vector<8x512xf32> to vector<8x128xf32>
    %139 = math.tanh %138 : vector<8x128xf32>
    %140 = vector.extract_strided_slice %121 {offsets = [0, 384], sizes = [8, 128], strides = [1, 1]} : vector<8x512xf32> to vector<8x128xf32>
    %cst_61 = arith.constant 5.000000e-01 : f32
    %141 = vector.broadcast %cst_61 : f32 to vector<8x128xf32>
    %142 = arith.mulf %141, %140 : vector<8x128xf32>
    %143 = math.tanh %142 : vector<8x128xf32>
    %cst_62 = arith.constant 5.000000e-01 : f32
    %144 = vector.broadcast %cst_62 : f32 to vector<8x128xf32>
    %145 = arith.mulf %144, %143 : vector<8x128xf32>
    %cst_63 = arith.constant 5.000000e-01 : f32
    %146 = vector.broadcast %cst_63 : f32 to vector<8x128xf32>
    %147 = arith.addf %145, %146 : vector<8x128xf32>
    %148 = arith.mulf %137, %114 : vector<8x128xf32>
    %149 = arith.mulf %129, %139 : vector<8x128xf32>
    %150 = arith.addf %148, %149 : vector<8x128xf32>
    %151 = math.tanh %150 : vector<8x128xf32>
    %152 = arith.mulf %147, %151 : vector<8x128xf32>
    %c24_64 = arith.constant 24 : index
    %c0_65 = arith.constant 0 : index
    %153 = vector.load %arg12[%c24_64, %c0_65] : memref<64x128xf32, #tpu.memory_space<vmem>>, vector<8x128xf32>
    tpu.vector_store %arg12[%c24_64, %c0_65], %152 {strides = array<i32>} : memref<64x128xf32, #tpu.memory_space<vmem>>, vector<8x128xf32>,
    %c32 = arith.constant 32 : index
    %c0_66 = arith.constant 0 : index
    %154 = vector.load %arg11[%c32, %c0_66] : memref<64x512xf32, #tpu.memory_space<vmem>>, vector<8x512xf32>
    %155 = arith.truncf %152 : vector<8x128xf32> to vector<8x128xbf16>
    %cst_67 = arith.constant dense<0.000000e+00> : vector<8x512xf32>
    %156 = tpu.matmul %155, %7, %cst_67 {dimension_numbers = #tpu.dot_dimension_numbers<[1], [0], [0], [1], [0, 0, 1, 1], [], []>} : vector<8x128xbf16>, vector<128x512xbf16>, vector<8x512xf32> -> vector<8x512xf32>
    %157 = arith.addf %154, %156 : vector<8x512xf32>
    %158 = vector.extract_strided_slice %157 {offsets = [0, 0], sizes = [8, 128], strides = [1, 1]} : vector<8x512xf32> to vector<8x128xf32>
    %cst_68 = arith.constant 5.000000e-01 : f32
    %159 = vector.broadcast %cst_68 : f32 to vector<8x128xf32>
    %160 = arith.mulf %159, %158 : vector<8x128xf32>
    %161 = math.tanh %160 : vector<8x128xf32>
    %cst_69 = arith.constant 5.000000e-01 : f32
    %162 = vector.broadcast %cst_69 : f32 to vector<8x128xf32>
    %163 = arith.mulf %162, %161 : vector<8x128xf32>
    %cst_70 = arith.constant 5.000000e-01 : f32
    %164 = vector.broadcast %cst_70 : f32 to vector<8x128xf32>
    %165 = arith.addf %163, %164 : vector<8x128xf32>
    %166 = vector.extract_strided_slice %157 {offsets = [0, 128], sizes = [8, 128], strides = [1, 1]} : vector<8x512xf32> to vector<8x128xf32>
    %cst_71 = arith.constant 5.000000e-01 : f32
    %167 = vector.broadcast %cst_71 : f32 to vector<8x128xf32>
    %168 = arith.mulf %167, %166 : vector<8x128xf32>
    %169 = math.tanh %168 : vector<8x128xf32>
    %cst_72 = arith.constant 5.000000e-01 : f32
    %170 = vector.broadcast %cst_72 : f32 to vector<8x128xf32>
    %171 = arith.mulf %170, %169 : vector<8x128xf32>
    %cst_73 = arith.constant 5.000000e-01 : f32
    %172 = vector.broadcast %cst_73 : f32 to vector<8x128xf32>
    %173 = arith.addf %171, %172 : vector<8x128xf32>
    %174 = vector.extract_strided_slice %157 {offsets = [0, 256], sizes = [8, 128], strides = [1, 1]} : vector<8x512xf32> to vector<8x128xf32>
    %175 = math.tanh %174 : vector<8x128xf32>
    %176 = vector.extract_strided_slice %157 {offsets = [0, 384], sizes = [8, 128], strides = [1, 1]} : vector<8x512xf32> to vector<8x128xf32>
    %cst_74 = arith.constant 5.000000e-01 : f32
    %177 = vector.broadcast %cst_74 : f32 to vector<8x128xf32>
    %178 = arith.mulf %177, %176 : vector<8x128xf32>
    %179 = math.tanh %178 : vector<8x128xf32>
    %cst_75 = arith.constant 5.000000e-01 : f32
    %180 = vector.broadcast %cst_75 : f32 to vector<8x128xf32>
    %181 = arith.mulf %180, %179 : vector<8x128xf32>
    %cst_76 = arith.constant 5.000000e-01 : f32
    %182 = vector.broadcast %cst_76 : f32 to vector<8x128xf32>
    %183 = arith.addf %181, %182 : vector<8x128xf32>
    %184 = arith.mulf %173, %150 : vector<8x128xf32>
    %185 = arith.mulf %165, %175 : vector<8x128xf32>
    %186 = arith.addf %184, %185 : vector<8x128xf32>
    %187 = math.tanh %186 : vector<8x128xf32>
    %188 = arith.mulf %183, %187 : vector<8x128xf32>
    %c32_77 = arith.constant 32 : index
    %c0_78 = arith.constant 0 : index
    %189 = vector.load %arg12[%c32_77, %c0_78] : memref<64x128xf32, #tpu.memory_space<vmem>>, vector<8x128xf32>
    tpu.vector_store %arg12[%c32_77, %c0_78], %188 {strides = array<i32>} : memref<64x128xf32, #tpu.memory_space<vmem>>, vector<8x128xf32>,
    %c40 = arith.constant 40 : index
    %c0_79 = arith.constant 0 : index
    %190 = vector.load %arg11[%c40, %c0_79] : memref<64x512xf32, #tpu.memory_space<vmem>>, vector<8x512xf32>
    %191 = arith.truncf %188 : vector<8x128xf32> to vector<8x128xbf16>
    %cst_80 = arith.constant dense<0.000000e+00> : vector<8x512xf32>
    %192 = tpu.matmul %191, %7, %cst_80 {dimension_numbers = #tpu.dot_dimension_numbers<[1], [0], [0], [1], [0, 0, 1, 1], [], []>} : vector<8x128xbf16>, vector<128x512xbf16>, vector<8x512xf32> -> vector<8x512xf32>
    %193 = arith.addf %190, %192 : vector<8x512xf32>
    %194 = vector.extract_strided_slice %193 {offsets = [0, 0], sizes = [8, 128], strides = [1, 1]} : vector<8x512xf32> to vector<8x128xf32>
    %cst_81 = arith.constant 5.000000e-01 : f32
    %195 = vector.broadcast %cst_81 : f32 to vector<8x128xf32>
    %196 = arith.mulf %195, %194 : vector<8x128xf32>
    %197 = math.tanh %196 : vector<8x128xf32>
    %cst_82 = arith.constant 5.000000e-01 : f32
    %198 = vector.broadcast %cst_82 : f32 to vector<8x128xf32>
    %199 = arith.mulf %198, %197 : vector<8x128xf32>
    %cst_83 = arith.constant 5.000000e-01 : f32
    %200 = vector.broadcast %cst_83 : f32 to vector<8x128xf32>
    %201 = arith.addf %199, %200 : vector<8x128xf32>
    %202 = vector.extract_strided_slice %193 {offsets = [0, 128], sizes = [8, 128], strides = [1, 1]} : vector<8x512xf32> to vector<8x128xf32>
    %cst_84 = arith.constant 5.000000e-01 : f32
    %203 = vector.broadcast %cst_84 : f32 to vector<8x128xf32>
    %204 = arith.mulf %203, %202 : vector<8x128xf32>
    %205 = math.tanh %204 : vector<8x128xf32>
    %cst_85 = arith.constant 5.000000e-01 : f32
    %206 = vector.broadcast %cst_85 : f32 to vector<8x128xf32>
    %207 = arith.mulf %206, %205 : vector<8x128xf32>
    %cst_86 = arith.constant 5.000000e-01 : f32
    %208 = vector.broadcast %cst_86 : f32 to vector<8x128xf32>
    %209 = arith.addf %207, %208 : vector<8x128xf32>
    %210 = vector.extract_strided_slice %193 {offsets = [0, 256], sizes = [8, 128], strides = [1, 1]} : vector<8x512xf32> to vector<8x128xf32>
    %211 = math.tanh %210 : vector<8x128xf32>
    %212 = vector.extract_strided_slice %193 {offsets = [0, 384], sizes = [8, 128], strides = [1, 1]} : vector<8x512xf32> to vector<8x128xf32>
    %cst_87 = arith.constant 5.000000e-01 : f32
    %213 = vector.broadcast %cst_87 : f32 to vector<8x128xf32>
    %214 = arith.mulf %213, %212 : vector<8x128xf32>
    %215 = math.tanh %214 : vector<8x128xf32>
    %cst_88 = arith.constant 5.000000e-01 : f32
    %216 = vector.broadcast %cst_88 : f32 to vector<8x128xf32>
    %217 = arith.mulf %216, %215 : vector<8x128xf32>
    %cst_89 = arith.constant 5.000000e-01 : f32
    %218 = vector.broadcast %cst_89 : f32 to vector<8x128xf32>
    %219 = arith.addf %217, %218 : vector<8x128xf32>
    %220 = arith.mulf %209, %186 : vector<8x128xf32>
    %221 = arith.mulf %201, %211 : vector<8x128xf32>
    %222 = arith.addf %220, %221 : vector<8x128xf32>
    %223 = math.tanh %222 : vector<8x128xf32>
    %224 = arith.mulf %219, %223 : vector<8x128xf32>
    %c40_90 = arith.constant 40 : index
    %c0_91 = arith.constant 0 : index
    %225 = vector.load %arg12[%c40_90, %c0_91] : memref<64x128xf32, #tpu.memory_space<vmem>>, vector<8x128xf32>
    tpu.vector_store %arg12[%c40_90, %c0_91], %224 {strides = array<i32>} : memref<64x128xf32, #tpu.memory_space<vmem>>, vector<8x128xf32>,
    %c48 = arith.constant 48 : index
    %c0_92 = arith.constant 0 : index
    %226 = vector.load %arg11[%c48, %c0_92] : memref<64x512xf32, #tpu.memory_space<vmem>>, vector<8x512xf32>
    %227 = arith.truncf %224 : vector<8x128xf32> to vector<8x128xbf16>
    %cst_93 = arith.constant dense<0.000000e+00> : vector<8x512xf32>
    %228 = tpu.matmul %227, %7, %cst_93 {dimension_numbers = #tpu.dot_dimension_numbers<[1], [0], [0], [1], [0, 0, 1, 1], [], []>} : vector<8x128xbf16>, vector<128x512xbf16>, vector<8x512xf32> -> vector<8x512xf32>
    %229 = arith.addf %226, %228 : vector<8x512xf32>
    %230 = vector.extract_strided_slice %229 {offsets = [0, 0], sizes = [8, 128], strides = [1, 1]} : vector<8x512xf32> to vector<8x128xf32>
    %cst_94 = arith.constant 5.000000e-01 : f32
    %231 = vector.broadcast %cst_94 : f32 to vector<8x128xf32>
    %232 = arith.mulf %231, %230 : vector<8x128xf32>
    %233 = math.tanh %232 : vector<8x128xf32>
    %cst_95 = arith.constant 5.000000e-01 : f32
    %234 = vector.broadcast %cst_95 : f32 to vector<8x128xf32>
    %235 = arith.mulf %234, %233 : vector<8x128xf32>
    %cst_96 = arith.constant 5.000000e-01 : f32
    %236 = vector.broadcast %cst_96 : f32 to vector<8x128xf32>
    %237 = arith.addf %235, %236 : vector<8x128xf32>
    %238 = vector.extract_strided_slice %229 {offsets = [0, 128], sizes = [8, 128], strides = [1, 1]} : vector<8x512xf32> to vector<8x128xf32>
    %cst_97 = arith.constant 5.000000e-01 : f32
    %239 = vector.broadcast %cst_97 : f32 to vector<8x128xf32>
    %240 = arith.mulf %239, %238 : vector<8x128xf32>
    %241 = math.tanh %240 : vector<8x128xf32>
    %cst_98 = arith.constant 5.000000e-01 : f32
    %242 = vector.broadcast %cst_98 : f32 to vector<8x128xf32>
    %243 = arith.mulf %242, %241 : vector<8x128xf32>
    %cst_99 = arith.constant 5.000000e-01 : f32
    %244 = vector.broadcast %cst_99 : f32 to vector<8x128xf32>
    %245 = arith.addf %243, %244 : vector<8x128xf32>
    %246 = vector.extract_strided_slice %229 {offsets = [0, 256], sizes = [8, 128], strides = [1, 1]} : vector<8x512xf32> to vector<8x128xf32>
    %247 = math.tanh %246 : vector<8x128xf32>
    %248 = vector.extract_strided_slice %229 {offsets = [0, 384], sizes = [8, 128], strides = [1, 1]} : vector<8x512xf32> to vector<8x128xf32>
    %cst_100 = arith.constant 5.000000e-01 : f32
    %249 = vector.broadcast %cst_100 : f32 to vector<8x128xf32>
    %250 = arith.mulf %249, %248 : vector<8x128xf32>
    %251 = math.tanh %250 : vector<8x128xf32>
    %cst_101 = arith.constant 5.000000e-01 : f32
    %252 = vector.broadcast %cst_101 : f32 to vector<8x128xf32>
    %253 = arith.mulf %252, %251 : vector<8x128xf32>
    %cst_102 = arith.constant 5.000000e-01 : f32
    %254 = vector.broadcast %cst_102 : f32 to vector<8x128xf32>
    %255 = arith.addf %253, %254 : vector<8x128xf32>
    %256 = arith.mulf %245, %222 : vector<8x128xf32>
    %257 = arith.mulf %237, %247 : vector<8x128xf32>
    %258 = arith.addf %256, %257 : vector<8x128xf32>
    %259 = math.tanh %258 : vector<8x128xf32>
    %260 = arith.mulf %255, %259 : vector<8x128xf32>
    %c48_103 = arith.constant 48 : index
    %c0_104 = arith.constant 0 : index
    %261 = vector.load %arg12[%c48_103, %c0_104] : memref<64x128xf32, #tpu.memory_space<vmem>>, vector<8x128xf32>
    tpu.vector_store %arg12[%c48_103, %c0_104], %260 {strides = array<i32>} : memref<64x128xf32, #tpu.memory_space<vmem>>, vector<8x128xf32>,
    %c56 = arith.constant 56 : index
    %c0_105 = arith.constant 0 : index
    %262 = vector.load %arg11[%c56, %c0_105] : memref<64x512xf32, #tpu.memory_space<vmem>>, vector<8x512xf32>
    %263 = arith.truncf %260 : vector<8x128xf32> to vector<8x128xbf16>
    %cst_106 = arith.constant dense<0.000000e+00> : vector<8x512xf32>
    %264 = tpu.matmul %263, %7, %cst_106 {dimension_numbers = #tpu.dot_dimension_numbers<[1], [0], [0], [1], [0, 0, 1, 1], [], []>} : vector<8x128xbf16>, vector<128x512xbf16>, vector<8x512xf32> -> vector<8x512xf32>
    %265 = arith.addf %262, %264 : vector<8x512xf32>
    %266 = vector.extract_strided_slice %265 {offsets = [0, 0], sizes = [8, 128], strides = [1, 1]} : vector<8x512xf32> to vector<8x128xf32>
    %cst_107 = arith.constant 5.000000e-01 : f32
    %267 = vector.broadcast %cst_107 : f32 to vector<8x128xf32>
    %268 = arith.mulf %267, %266 : vector<8x128xf32>
    %269 = math.tanh %268 : vector<8x128xf32>
    %cst_108 = arith.constant 5.000000e-01 : f32
    %270 = vector.broadcast %cst_108 : f32 to vector<8x128xf32>
    %271 = arith.mulf %270, %269 : vector<8x128xf32>
    %cst_109 = arith.constant 5.000000e-01 : f32
    %272 = vector.broadcast %cst_109 : f32 to vector<8x128xf32>
    %273 = arith.addf %271, %272 : vector<8x128xf32>
    %274 = vector.extract_strided_slice %265 {offsets = [0, 128], sizes = [8, 128], strides = [1, 1]} : vector<8x512xf32> to vector<8x128xf32>
    %cst_110 = arith.constant 5.000000e-01 : f32
    %275 = vector.broadcast %cst_110 : f32 to vector<8x128xf32>
    %276 = arith.mulf %275, %274 : vector<8x128xf32>
    %277 = math.tanh %276 : vector<8x128xf32>
    %cst_111 = arith.constant 5.000000e-01 : f32
    %278 = vector.broadcast %cst_111 : f32 to vector<8x128xf32>
    %279 = arith.mulf %278, %277 : vector<8x128xf32>
    %cst_112 = arith.constant 5.000000e-01 : f32
    %280 = vector.broadcast %cst_112 : f32 to vector<8x128xf32>
    %281 = arith.addf %279, %280 : vector<8x128xf32>
    %282 = vector.extract_strided_slice %265 {offsets = [0, 256], sizes = [8, 128], strides = [1, 1]} : vector<8x512xf32> to vector<8x128xf32>
    %283 = math.tanh %282 : vector<8x128xf32>
    %284 = vector.extract_strided_slice %265 {offsets = [0, 384], sizes = [8, 128], strides = [1, 1]} : vector<8x512xf32> to vector<8x128xf32>
    %cst_113 = arith.constant 5.000000e-01 : f32
    %285 = vector.broadcast %cst_113 : f32 to vector<8x128xf32>
    %286 = arith.mulf %285, %284 : vector<8x128xf32>
    %287 = math.tanh %286 : vector<8x128xf32>
    %cst_114 = arith.constant 5.000000e-01 : f32
    %288 = vector.broadcast %cst_114 : f32 to vector<8x128xf32>
    %289 = arith.mulf %288, %287 : vector<8x128xf32>
    %cst_115 = arith.constant 5.000000e-01 : f32
    %290 = vector.broadcast %cst_115 : f32 to vector<8x128xf32>
    %291 = arith.addf %289, %290 : vector<8x128xf32>
    %292 = arith.mulf %281, %258 : vector<8x128xf32>
    %293 = arith.mulf %273, %283 : vector<8x128xf32>
    %294 = arith.addf %292, %293 : vector<8x128xf32>
    %295 = math.tanh %294 : vector<8x128xf32>
    %296 = arith.mulf %291, %295 : vector<8x128xf32>
    %c56_116 = arith.constant 56 : index
    %c0_117 = arith.constant 0 : index
    %297 = vector.load %arg12[%c56_116, %c0_117] : memref<64x128xf32, #tpu.memory_space<vmem>>, vector<8x128xf32>
    tpu.vector_store %arg12[%c56_116, %c0_117], %296 {strides = array<i32>} : memref<64x128xf32, #tpu.memory_space<vmem>>, vector<8x128xf32>,
    %c0_118 = arith.constant 0 : index
    %c0_119 = arith.constant 0 : index
    %298 = vector.load %arg12[%c0_118, %c0_119] : memref<64x128xf32, #tpu.memory_space<vmem>>, vector<64x128xf32>
    %299 = arith.truncf %298 : vector<64x128xf32> to vector<64x128xbf16>
    %c0_120 = arith.constant 0 : index
    %c0_121 = arith.constant 0 : index
    %300 = vector.load %arg6[%c0_120, %c0_121] : memref<128x128xbf16, #tpu.memory_space<vmem>>, vector<128x128xbf16>
    %cst_122 = arith.constant dense<0.000000e+00> : vector<64x128xf32>
    %301 = tpu.matmul %299, %300, %cst_122 {dimension_numbers = #tpu.dot_dimension_numbers<[1], [0], [0], [1], [0, 0, 1, 1], [], []>} : vector<64x128xbf16>, vector<128x128xbf16>, vector<64x128xf32> -> vector<64x128xf32>
    %c0_123 = arith.constant 0 : index
    %c0_124 = arith.constant 0 : index
    %302 = vector.load %arg7[%c0_123, %c0_124] : memref<1x128xf32, #tpu.memory_space<vmem>>, vector<1x128xf32>
    %303 = vector.broadcast %302 : vector<1x128xf32> to vector<64x128xf32>
    %304 = arith.addf %301, %303 : vector<64x128xf32>
    %c0_125 = arith.constant 0 : index
    %c0_126 = arith.constant 0 : index
    %305 = vector.load %arg8[%c0_125, %c0_126] : memref<64x128xf32, #tpu.memory_space<vmem>>, vector<64x128xf32>
    tpu.vector_store %arg8[%c0_125, %c0_126], %304 {strides = array<i32>} : memref<64x128xf32, #tpu.memory_space<vmem>>, vector<64x128xf32>,
    %c0_127 = arith.constant 0 : index
    %c0_128 = arith.constant 0 : index
    %306 = vector.load %arg9[%c0_127, %c0_128] : memref<8x128xf32, #tpu.memory_space<vmem>>, vector<8x128xf32>
    tpu.vector_store %arg9[%c0_127, %c0_128], %296 {strides = array<i32>} : memref<8x128xf32, #tpu.memory_space<vmem>>, vector<8x128xf32>,
    %c0_129 = arith.constant 0 : index
    %c0_130 = arith.constant 0 : index
    %307 = vector.load %arg10[%c0_129, %c0_130] : memref<8x128xf32, #tpu.memory_space<vmem>>, vector<8x128xf32>
    tpu.vector_store %arg10[%c0_129, %c0_130], %294 {strides = array<i32>} : memref<8x128xf32, #tpu.memory_space<vmem>>, vector<8x128xf32>,
    return
  }
}

</mosaic_0001>

<bundles_post_ra>
// kernel: lstm_model_forward.1
= control target key start
LH: loop header
LB: loop body
LE: loop exit
PB: predicated region body
PF: predicated region fallthrough
CT: control target
= control target key end

     0   :  { %16 = vsyncpa [#allocation5], 0  ;;  %s1888_s13 = smov [#allocation4]   ;;  %s2735_s0 = inlined_call_operand.vmem [shape: bf16[64,32], index: 0, kind: input, shape index: {}]   ;;  %s2736_s1 = inlined_call_operand.vmem [shape: f32[8,128], index: 1, kind: input, shape index: {}]   ;;  %s2737_s2 = inlined_call_operand.vmem [shape: f32[8,128], index: 2, kind: input, shape index: {}]   ;;  %s2738_s3 = inlined_call_operand.vmem [shape: bf16[32,512], index: 3, kind: input, shape index: {}]   ;;  %s2739_s4 = inlined_call_operand.vmem [shape: bf16[128,512], index: 4, kind: input, shape index: {}]   ;;  %s2740_s5 = inlined_call_operand.vmem [shape: f32[1,512], index: 5, kind: input, shape index: {}]   ;;  %s2741_s6 = inlined_call_operand.hbm [shape: bf16[128,128], index: 6, kind: input, shape index: {}]   ;;  %s2742_s7 = inlined_call_operand.vmem [shape: f32[1,128], index: 7, kind: input, shape index: {}]   ;;  %s2743_s8 = inlined_call_operand.vmem [shape: f32[64,128], index: 8, kind: output, shape index: {0}]   ;;  %s2744_s9 = inlined_call_operand.vmem [shape: f32[8,128], index: 9, kind: output, shape index: {1}]   ;;  %s2745_s10 = inlined_call_operand.vmem [shape: f32[8,128], index: 10, kind: output, shape index: {2}]  }
   0x1   :  { %s34_s14 = sshll.u32 %s1888_s13, 4  ;;  %s35_s14 = int_to_ptr.vmem [resolvable:$true] %s34_s14 }
   0x2   :  { %s1874_s15 = scalar_lea.vmem %s35_s14, 1024  ;;  %p1879_p1 = scmp.lt.s32.totalorder %s35_s14, %s35_s14 }
   0x3   :  { %p1875_p0 = scmp.ne.s32.totalorder %s35_s14, %s1874_s15  ;;  %p1880_p2 = scmp.lt.s32.totalorder %s1874_s15, %s1874_s15 }
   0x5   :  { %p1881_p3 = por %p1880_p2, %p1879_p1 }
   0x7   :  { %p1882_p4 = pnand %p1881_p3, %p1875_p0 }
   0x9   :  { %1885 = shalt.err (!%p1882_p4)
}
   0xa   :  { %s1889_s16 = smov 64   ;;  %s1890_s17 = smov 4  }
   0xb   :  { %40 = dma.hbm_to_vmem [thread:$0]  %s2741_s6, 1024, %s35_s14, [#allocation5], %s1889_s16, %s1889_s16, %s1890_s17  }
   0xc   :  { %1886 = dma.done.wait [#allocation5], 1024  }
   0xd   :  { %1887 = vsyncadd [#allocation5], 4294966272  ;;  %v2746_v0 = vmov 0   ;;  %v1682_v1 = vld [vmem:[%s2738_s3 + $0x24] ss:$16 sps:$4 sm:$0xff]   ;;  %vm145_vm0 = vcmask 261120   ;;  %v65_v47 = vlaneseq }
   0xe   :  { %190 = vmatprep.mubr.bf16.mxu1 %v2746_v0  ;;  %567 = vmatprep.mubr.bf16.mxu0 %v2746_v0  ;;  %v1958_v2 = vld [vmem:[%s2739_s4 + $0xe4] ss:$16 sps:$4 sm:$0xff]   ;;  %v1686_v3 = vld [vmem:[%s2738_s3 + $0x20] ss:$16 sps:$4 sm:$0xff]   ;;  %v1695_v10 = vld [vmem:[%s2738_s3 + $0x28] ss:$16 sps:$4 sm:$0xff]  }
   0xf   :  { %170 = vmatprep.subr.bf16.mxu1 %v1682_v1  ;;  %v1966_v4 = vld [vmem:[%s2739_s4 + $0xe0] ss:$16 sps:$4 sm:$0xff]   ;;  %535 = vmatprep.subr.bf16.mxu0 %v1958_v2  ;;  %v1688_v5 = vld [vmem:[%s2738_s3 + $0x4] ss:$16 sps:$4 sm:$0xff]   ;;  %v1697_v11 = vld [vmem:[%s2738_s3 + $0x2c] ss:$16 sps:$4 sm:$0xff]  }
  0x10   :  { %171 = vmatpush1.bf16.msra.mxu1 %v1686_v3  ;;  %536 = vmatpush1.bf16.msra.mxu0 %v1966_v4  ;;  %v1976_v6 = vld [vmem:[%s2739_s4 + $0xc4] ss:$16 sps:$4 sm:$0xff]   ;;  %v1692_v7 = vld [vmem:[%s2738_s3] ss:$16 sps:$4 sm:$0xff]   ;;  %v1704_v17 = vld [vmem:[%s2735_s0 + $0x8] sm:$0xff]   ;;  %v66_v48 = vshrl.u32 %v65_v47, 7 }
  0x11   :  { %172 = vmatprep.subr.bf16.mxu1 %v1688_v5  ;;  %v1984_v8 = vld [vmem:[%s2739_s4 + $0xc0] ss:$16 sps:$4 sm:$0xff]   ;;  %537 = vmatprep.subr.bf16.mxu0 %v1976_v6  ;;  %v2000_v12 = vld [vmem:[%s2739_s4 + $0xa4] ss:$16 sps:$4 sm:$0xff]   ;;  %v1714_v19 = vld [vmem:[%s2738_s3 + $0xc] ss:$16 sps:$4 sm:$0xff]  }
  0x12   :  { %v1694_v9 = vld [vmem:[%s2735_s0] sm:$0xff]   ;;  %v1712_v21 = vld [vmem:[%s2738_s3 + $0x8] ss:$16 sps:$4 sm:$0xff]   ;;  %v2065_v24 = vld [vmem:[%s2739_s4 + $0xec] ss:$16 sps:$4 sm:$0xff]   ;;  %v67_v49 = vsub.s32 0, %v66_v48 }
  0x13   :  { %v2005_v13 = vld [vmem:[%s2739_s4 + $0xa0] ss:$16 sps:$4 sm:$0xff]   ;;  %v2010_v14 = vld [vmem:[%s2739_s4 + $0x84] ss:$16 sps:$4 sm:$0xff]   ;;  %v1721_v30 = vld [vmem:[%s2735_s0 + $0x18] sm:$0xff]   ;;  %v71_v52 = vsub.s32 1, %v66_v48 }
  0x14   :  { %173 = vmatpush1.bf16.msra.mxu1 %v1692_v7  ;;  %538 = vmatpush1.bf16.msra.mxu0 %v1984_v8  ;;  %v2018_v15 = vld [vmem:[%s2739_s4 + $0x80] ss:$16 sps:$4 sm:$0xff]   ;;  %v2025_v16 = vld [vmem:[%s2739_s4 + $0x64] ss:$16 sps:$4 sm:$0xff]   ;;  %v2108_v32 = vld [vmem:[%s2739_s4 + $0xe8] ss:$16 sps:$4 sm:$0xff]  }
  0x15   :  { %243 = vmatprep.subr.bf16.mxu1 %v1697_v11  ;;  %539 = vmatprep.subr.bf16.mxu0 %v2000_v12  ;;  %v2033_v18 = vld [vmem:[%s2739_s4 + $0x60] ss:$16 sps:$4 sm:$0xff]   ;;  %v2043_v20 = vld [vmem:[%s2739_s4 + $0x44] ss:$16 sps:$4 sm:$0xff]   ;;  %v2114_v33 = vld [vmem:[%s2739_s4 + $0xcc] ss:$16 sps:$4 sm:$0xff]  }
  0x16   :  { %v2053_v22 = vld [vmem:[%s2739_s4 + $0x40] ss:$16 sps:$4 sm:$0xff]   ;;  %v2060_v23 = vld [vmem:[%s2739_s4 + $0x24] ss:$16 sps:$4 sm:$0xff]   ;;  %v2122_v34 = vld [vmem:[%s2739_s4 + $0xc8] ss:$16 sps:$4 sm:$0xff]  }
  0x17   :  { %1593 = vmatmul.mubr.msk.bf16.vlgmr.msra.gmra.mxu1 %vm145_vm0, %v1694_v9  ;;  %v1711_v25 = vld [vmem:[%s2735_s0 + $0x10] sm:$0xff]   ;;  %v368_v29 = vld [vmem:[%s2736_s1] sm:$0xff]  ;;  %v2129_v35 = vld [vmem:[%s2739_s4 + $0xac] ss:$16 sps:$4 sm:$0xff]  }
  0x18   :  { %244 = vmatpush1.bf16.msra.mxu1 %v1695_v10  ;;  %540 = vmatpush1.bf16.msra.mxu0 %v2005_v13  ;;  %v2075_v26 = vld [vmem:[%s2739_s4 + $0x20] ss:$16 sps:$4 sm:$0xff]   ;;  %v2081_v27 = vld [vmem:[%s2739_s4 + $0x4] ss:$16 sps:$4 sm:$0xff]   ;;  %v374_v31 = vpack.c.bf16 %v368_v29, %v368_v29  ;;  %v2137_v36 = vld [vmem:[%s2739_s4 + $0xa8] ss:$16 sps:$4 sm:$0xff]  }
  0x19   :  { %541 = vmatprep.subr.bf16.mxu0 %v2010_v14  ;;  %200 = vmatprep.mubr.bf16.mxu1 %v2746_v0  ;;  %v2087_v28 = vld [vmem:[%s2739_s4] ss:$16 sps:$4 sm:$0xff]   ;;  %v2143_v37 = vld [vmem:[%s2739_s4 + $0x8c] ss:$16 sps:$4 sm:$0xff]   ;;  %v2152_v38 = vld [vmem:[%s2739_s4 + $0x88] ss:$16 sps:$4 sm:$0xff]  }
  0x1a   :  { %245 = vmatprep.subr.bf16.mxu1 %v1714_v19  ;;  %v2159_v39 = vld [vmem:[%s2739_s4 + $0x6c] ss:$16 sps:$4 sm:$0xff]   ;;  %v2167_v40 = vld [vmem:[%s2739_s4 + $0x68] ss:$16 sps:$4 sm:$0xff]   ;;  %v63_v50 = vld [vmem:[%s2740_s5] sm:$0xf] }
  0x1b   :  { %v2173_v41 = vld [vmem:[%s2739_s4 + $0x4c] ss:$16 sps:$4 sm:$0xff]   ;;  %v2182_v42 = vld [vmem:[%s2739_s4 + $0x48] ss:$16 sps:$4 sm:$0xff]   ;;  %v68_v54 = vrot.slane %v63_v50, %v67_v49  ;;  %v72_v56 = vrot.slane %v63_v50, %v71_v52 }
  0x1c   :  { %542 = vmatpush1.bf16.msra.mxu0 %v2018_v15  ;;  %246 = vmatpush1.bf16.msra.mxu1 %v1712_v21  ;;  %v2189_v43 = vld [vmem:[%s2739_s4 + $0x2c] ss:$16 sps:$4 sm:$0xff]   ;;  %v2197_v44 = vld [vmem:[%s2739_s4 + $0x28] ss:$16 sps:$4 sm:$0xff]  }
  0x1d   :  { %543 = vmatprep.subr.bf16.mxu0 %v2025_v16  ;;  %576 = vmatprep.subr.bf16.mxu1 %v2065_v24  ;;  %v2203_v45 = vld [vmem:[%s2739_s4 + $0xc] ss:$16 sps:$4 sm:$0xff]   ;;  %v2212_v46 = vld [vmem:[%s2739_s4 + $0x8] ss:$16 sps:$4 sm:$0xff]  }
  0x1f   :  { %1594 = vmatmul.mubr.msk.bf16.gmra.mxu1 %vm145_vm0, %v1704_v17 }
  0x20   :  { %544 = vmatpush1.bf16.msra.mxu0 %v2033_v18  ;;  %210 = vmatprep.mubr.bf16.mxu1 %v2746_v0 }
  0x21   :  { %545 = vmatprep.subr.bf16.mxu0 %v2043_v20 }
  0x24   :  { %546 = vmatpush1.bf16.msra.mxu0 %v2053_v22 }
  0x25   :  { %547 = vmatprep.subr.bf16.mxu0 %v2060_v23 }
  0x27   :  { %1595 = vmatmul.mubr.msk.bf16.gmra.mxu1 %vm145_vm0, %v1711_v25 }
  0x28   :  { %548 = vmatpush1.bf16.msra.mxu0 %v2075_v26  ;;  %220 = vmatprep.mubr.bf16.mxu1 %v2746_v0 }
  0x29   :  { %549 = vmatprep.subr.bf16.mxu0 %v2081_v27 }
  0x2c   :  { %550 = vmatpush1.bf16.msra.mxu0 %v2087_v28 }
  0x2d   :  { %645 = vmatprep.subr.bf16.mxu0 %v1958_v2 }
  0x2f   :  { %1596 = vmatmul.mubr.msk.bf16.gmra.mxu1 %vm145_vm0, %v1721_v30  ;;  %568 = vmatmul.mubr.bf16.vlgmr.msra.gmra.mxu0 %v374_v31 }
  0x30   :  { %263 = vmatprep.mubr.bf16.mxu1 %v2746_v0  ;;  %646 = vmatpush1.bf16.msra.mxu0 %v1966_v4 }
  0x31   :  { %647 = vmatprep.subr.bf16.mxu0 %v1976_v6  ;;  %677 = vmatprep.mubr.bf16.mxu0 %v2746_v0 }
  0x34   :  { %648 = vmatpush1.bf16.msra.mxu0 %v1984_v8 }
  0x35   :  { %649 = vmatprep.subr.bf16.mxu0 %v2000_v12 }
  0x37   :  { %1597 = vmatmul.mubr.msk.bf16.vlgmr.msra.gmra.mxu1 %vm145_vm0, %v1694_v9 }
  0x38   :  { %577 = vmatpush1.bf16.msra.mxu1 %v2108_v32  ;;  %273 = vmatprep.mubr.bf16.mxu1 %v2746_v0 }
  0x39   :  { %578 = vmatprep.subr.bf16.mxu1 %v2114_v33  ;;  %650 = vmatpush1.bf16.msra.mxu0 %v2005_v13 }
  0x3a   :  { %651 = vmatprep.subr.bf16.mxu0 %v2010_v14 }
  0x3c   :  { %579 = vmatpush1.bf16.msra.mxu1 %v2122_v34 }
  0x3d   :  { %580 = vmatprep.subr.bf16.mxu1 %v2129_v35  ;;  %652 = vmatpush1.bf16.msra.mxu0 %v2018_v15 }
  0x3e   :  { %653 = vmatprep.subr.bf16.mxu0 %v2025_v16 }
  0x3f   :  { %1598 = vmatmul.mubr.msk.bf16.gmra.mxu1 %vm145_vm0, %v1704_v17 }
  0x40   :  { %581 = vmatpush1.bf16.msra.mxu1 %v2137_v36  ;;  %283 = vmatprep.mubr.bf16.mxu1 %v2746_v0 }
  0x41   :  { %582 = vmatprep.subr.bf16.mxu1 %v2143_v37  ;;  %654 = vmatpush1.bf16.msra.mxu0 %v2033_v18 }
  0x42   :  { %655 = vmatprep.subr.bf16.mxu0 %v2043_v20 }
  0x44   :  { %583 = vmatpush1.bf16.msra.mxu1 %v2152_v38 }
  0x45   :  { %584 = vmatprep.subr.bf16.mxu1 %v2159_v39  ;;  %656 = vmatpush1.bf16.msra.mxu0 %v2053_v22 }
  0x46   :  { %657 = vmatprep.subr.bf16.mxu0 %v2060_v23 }
  0x47   :  { %1599 = vmatmul.mubr.msk.bf16.gmra.mxu1 %vm145_vm0, %v1711_v25 }
  0x48   :  { %585 = vmatpush1.bf16.msra.mxu1 %v2167_v40  ;;  %293 = vmatprep.mubr.bf16.mxu1 %v2746_v0 }
  0x49   :  { %586 = vmatprep.subr.bf16.mxu1 %v2173_v41  ;;  %658 = vmatpush1.bf16.msra.mxu0 %v2075_v26 }
  0x4a   :  { %659 = vmatprep.subr.bf16.mxu0 %v2081_v27 }
  0x4c   :  { %587 = vmatpush1.bf16.msra.mxu1 %v2182_v42 }
  0x4d   :  { %588 = vmatprep.subr.bf16.mxu1 %v2189_v43  ;;  %660 = vmatpush1.bf16.msra.mxu0 %v2087_v28 }
  0x4e   :  { %755 = vmatprep.subr.bf16.mxu0 %v1958_v2 }
  0x4f   :  { %1600 = vmatmul.mubr.msk.bf16.gmra.mxu1 %vm145_vm0, %v1721_v30 }
  0x50   :  { %589 = vmatpush1.bf16.msra.mxu1 %v2197_v44  ;;  %608 = vmatprep.mubr.bf16.mxu1 %v2746_v0 }
  0x51   :  { %590 = vmatprep.subr.bf16.mxu1 %v2203_v45 }
  0x54   :  { %591 = vmatpush1.bf16.msra.mxu1 %v2212_v46 }
  0x55   :  { %686 = vmatprep.subr.bf16.mxu1 %v2065_v24 }
  0x57   :  { %609 = vmatmul.mubr.bf16.vlgmr.msra.gmra.mxu1 %v374_v31 }
  0x58   :  { %687 = vmatpush1.bf16.msra.mxu1 %v2108_v32  ;;  %718 = vmatprep.mubr.bf16.mxu1 %v2746_v0 }
  0x59   :  { %688 = vmatprep.subr.bf16.mxu1 %v2114_v33 }
  0x5c   :  { %689 = vmatpush1.bf16.msra.mxu1 %v2122_v34 }
  0x5d   :  { %690 = vmatprep.subr.bf16.mxu1 %v2129_v35 }
  0x60   :  { %691 = vmatpush1.bf16.msra.mxu1 %v2137_v36 }
  0x61   :  { %692 = vmatprep.subr.bf16.mxu1 %v2143_v37 }
  0x64   :  { %693 = vmatpush1.bf16.msra.mxu1 %v2152_v38 }
  0x65   :  { %694 = vmatprep.subr.bf16.mxu1 %v2159_v39 }
  0x68   :  { %695 = vmatpush1.bf16.msra.mxu1 %v2167_v40 }
  0x69   :  { %696 = vmatprep.subr.bf16.mxu1 %v2173_v41 }
  0x6c   :  { %697 = vmatpush1.bf16.msra.mxu1 %v2182_v42 }
  0x6d   :  { %698 = vmatprep.subr.bf16.mxu1 %v2189_v43 }
  0x70   :  { %699 = vmatpush1.bf16.msra.mxu1 %v2197_v44 }
  0x71   :  { %700 = vmatprep.subr.bf16.mxu1 %v2203_v45 }
  0x74   :  { %701 = vmatpush1.bf16.msra.mxu1 %v2212_v46 }
  0x75   :  { %796 = vmatprep.subr.bf16.mxu1 %v2065_v24 }
  0xd7   :  { %v192_v51 = vpop.f32.mrf.mxu1 }
  0xd9   :  { %v194_v53 = vpop.f32.mrf.mxu1 }
  0xdb   :  { %v196_v55 = vpop.f32.mrf.mxu1 }
  0xdc   :  { %v2238_v57 = vadd.f32 %v196_v55, %v68_v54 }
  0xdd   :  { %v198_v58 = vpop.f32.mrf.mxu1 }
  0xde   :  { %v2240_v59 = vadd.f32 %v198_v58, %v72_v56 }
  0xdf   :  { %v202_v60 = vpop.f32.mrf.mxu1 }
  0xe0   :  { %v2242_v61 = vadd.f32 %v202_v60, %v68_v54 }
  0xe1   :  { %v204_v62 = vpop.f32.mrf.mxu1 }
  0xe2   :  { %v2244_v63 = vadd.f32 %v204_v62, %v72_v56 }
  0xe3   :  { %v206_v1 = vpop.f32.mrf.mxu1 }
  0xe4   :  { %v2246_v3 = vadd.f32 %v206_v1, %v68_v54 }
  0xe5   :  { %v208_v5 = vpop.f32.mrf.mxu1 }
  0xe6   :  { %2748 = vst [vmem:[#allocation7_spill] sm:$0xff] %v2246_v3  ;;  %v2248_v7 = vadd.f32 %v208_v5, %v72_v56 }
  0xe7   :  { %v212_v9 = vpop.f32.mrf.mxu1 }
  0xe8   :  { %2749 = vst [vmem:[#allocation8_spill] sm:$0xff] %v2248_v7  ;;  %v2250_v10 = vadd.f32 %v212_v9, %v68_v54 }
  0xe9   :  { %v214_v11 = vpop.f32.mrf.mxu1 }
  0xea   :  { %2750 = vst [vmem:[#allocation9_spill] sm:$0xff] %v2250_v10  ;;  %v2252_v17 = vadd.f32 %v214_v11, %v72_v56  ;;  %v75_v11 = vsub.s32 2, %v66_v48 }
  0xeb   :  { %v216_v19 = vpop.f32.mrf.mxu1 }
  0xec   :  { %2751 = vst [vmem:[#allocation10_spill] sm:$0xff] %v2252_v17  ;;  %v2254_v21 = vadd.f32 %v216_v19, %v68_v54 }
  0xed   :  { %v218_v25 = vpop.f32.mrf.mxu1 }
  0xee   :  { %2752 = vst [vmem:[#allocation11_spill] sm:$0xff] %v2254_v21  ;;  %v2256_v29 = vadd.f32 %v218_v25, %v72_v56  ;;  %v79_v25 = vsub.s32 3, %v66_v48  ;;  %v195_v48 = vadd.f32 %v194_v53, %v72_v56 }
  0xef   :  { %v222_v30 = vpop.f32.mrf.mxu1  ;;  %v569_v31 = vpop.f32.mrf.mxu0 }
  0xf0   :  { %2753 = vst [vmem:[#allocation12_spill] sm:$0xff] %v2256_v29  ;;  %v2258_v47 = vadd.f32 %v222_v30, %v68_v54  ;;  %v76_v29 = vrot.slane %v63_v50, %v75_v11  ;;  %v80_v30 = vrot.slane %v63_v50, %v79_v25  ;;  %v193_v50 = vadd.f32 %v192_v51, %v68_v54 }
  0xf1   :  { %v224_v49 = vpop.f32.mrf.mxu1  ;;  %v571_v52 = vpop.f32.mrf.mxu0 }
  0xf2   :  { %2754 = vst [vmem:[#allocation13_spill] sm:$0xff] %v2258_v47  ;;  %v2260_v55 = vadd.f32 %v224_v49, %v72_v56  ;;  %v617_v7 = vadd.f32 %v569_v31, %v193_v50 }
  0xf3   :  { %v226_v58 = vpop.f32.mrf.mxu1  ;;  %v573_v60 = vpop.f32.mrf.mxu0 }
  0xf4   :  { %2755 = vst [vmem:[#allocation14_spill] sm:$0xff] %v2260_v55  ;;  %v2262_v62 = vadd.f32 %v226_v58, %v68_v54 }
  0xf5   :  { %v228_v1 = vpop.f32.mrf.mxu1  ;;  %v574_v5 = vpop.f32.mrf.mxu0 }
  0xf6   :  { %2756 = vst [vmem:[#allocation15_spill] sm:$0xff] %v2262_v62  ;;  %v2264_v9 = vadd.f32 %v228_v1, %v72_v56 }
  0xf7   :  { %v265_v19 = vpop.f32.mrf.mxu1 }
  0xf8   :  { %2757 = vst [vmem:[#allocation16_spill] sm:$0xff] %v2264_v9 }
  0xf9   :  { %v267_v0 = vpop.f32.mrf.mxu1 }
  0xfb   :  { %v269_v21 = vpop.f32.mrf.mxu1 }
  0xfc   :  { %v2266_v47 = vadd.f32 %v269_v21, %v76_v29  ;;  %v618_v21 = vadd.f32 %v571_v52, %v195_v48  ;;  %v266_v48 = vadd.f32 %v265_v19, %v76_v29 }
  0xfd   :  { %v271_v17 = vpop.f32.mrf.mxu1 }
  0xfe   :  { %v2268_v49 = vadd.f32 %v271_v17, %v80_v30 }
  0xff   :  { %v275_v55 = vpop.f32.mrf.mxu1 }
 0x100   :  { %v2270_v60 = vadd.f32 %v275_v55, %v76_v29 }
 0x101   :  { %v277_v58 = vpop.f32.mrf.mxu1 }
 0x102   :  { %2758 = vst [vmem:[#allocation17_spill] sm:$0xff] %v2270_v60  ;;  %v2272_v62 = vadd.f32 %v277_v58, %v80_v30  ;;  %v625_v60 = vmul.f32 0.5, %v618_v21 }
 0x103   :  { %v279_v1 = vpop.f32.mrf.mxu1 }
 0x104   :  { %2759 = vst [vmem:[#allocation18_spill] sm:$0xff] %v2272_v62  ;;  %v2274_v5 = vadd.f32 %v279_v1, %v76_v29  ;;  %v621_v1 = vmul.f32 0.5, %v617_v7  ;;  %1754 = vtanh.f32 %v625_v60 }
 0x105   :  { %v281_v9 = vpop.f32.mrf.mxu1 }
 0x106   :  { %2760 = vst [vmem:[#allocation19_spill] sm:$0xff] %v2274_v5  ;;  %v2276_v10 = vadd.f32 %v281_v9, %v80_v30  ;;  %1756 = vtanh.f32 %v621_v1 }
 0x107   :  { %v285_v11 = vpop.f32.mrf.mxu1 }
 0x108   :  { %v2278_v25 = vadd.f32 %v285_v11, %v76_v29 }
 0x109   :  { %v287_v17 = vpop.f32.mrf.mxu1 }
 0x10a   :  { %v2280_v3 = vadd.f32 %v287_v17, %v80_v30 }
 0x10b   :  { %v289_v55 = vpop.f32.mrf.mxu1 }
 0x10c   :  { %v2282_v58 = vadd.f32 %v289_v55, %v76_v29 }
 0x10d   :  { %v291_v62 = vpop.f32.mrf.mxu1 }
 0x10e   :  { %v2284_v5 = vadd.f32 %v291_v62, %v80_v30  ;;  %v268_v62 = vadd.f32 %v267_v0, %v80_v30 }
 0x10f   :  { %v295_v53 = vpop.f32.mrf.mxu1 }
 0x110   :  { %2761 = vst [vmem:[#allocation20_spill] sm:$0xff] %v2284_v5  ;;  %v2286_v56 = vadd.f32 %v295_v53, %v76_v29 }
 0x111   :  { %v297_v51 = vpop.f32.mrf.mxu1  ;;  %v1755_v55 = vpop.eup %1754 }
 0x112   :  { %2762 = vst [vmem:[#allocation21_spill] sm:$0xff] %v2286_v56  ;;  %v2288_v54 = vadd.f32 %v297_v51, %v80_v30  ;;  %v627_v1 = vmul.f32 0.5, %v1755_v55 }
 0x113   :  { %v299_v52 = vpop.f32.mrf.mxu1  ;;  %v1757_v56 = vpop.eup %1756 }
 0x114   :  { %2763 = vst [vmem:[#allocation22_spill] sm:$0xff] %v2288_v54  ;;  %v2290_v31 = vadd.f32 %v299_v52, %v76_v29  ;;  %v623_v54 = vmul.f32 0.5, %v1757_v56  ;;  %v628_v5 = vadd.f32 0.5, %v627_v1  ;;  %v369_v29 = vld [vmem:[%s2737_s2] sm:$0xff] }
 0x115   :  { %v301_v9 = vpop.f32.mrf.mxu1 }
 0x116   :  { %v2292_v11 = vadd.f32 %v301_v9, %v80_v30  ;;  %v624_v19 = vadd.f32 0.5, %v623_v54  ;;  %v634_v9 = vmul.f32 %v628_v5, %v369_v29  ;;  %v2764_v5 = vmov 0  }
 0x117   :  { %v610_v50 = vpop.f32.mrf.mxu1 }
 0x118   :  { %v619_v21 = vadd.f32 %v610_v50, %v266_v48 }
 0x119   :  { %v612_v7 = vpop.f32.mrf.mxu1 }
 0x11a   :  { %1758 = vtanh.f32 %v619_v21  ;;  %v620_v60 = vadd.f32 %v612_v7, %v268_v62 }
 0x11b   :  { %v614_v17 = vpop.f32.mrf.mxu1 }
 0x11c   :  { %v630_v51 = vmul.f32 0.5, %v620_v60 }
 0x11d   :  { %v615_v53 = vpop.f32.mrf.mxu1 }
 0x11e   :  { %1760 = vtanh.f32 %v630_v51 }
 0x127   :  { %v1759_v52 = vpop.eup %1758 }
 0x128   :  { %v635_v48 = vmul.f32 %v1759_v52, %v624_v19 }
 0x12a   :  { %v2297_v0 = vadd.f32 %v635_v48, %v634_v9 }
 0x12b   :  { %v1761_v30 = vpop.eup %1760 }
 0x12c   :  { %1762 = vtanh.f32 %v2297_v0  ;;  %v632_v50 = vmul.f32 0.5, %v1761_v30 }
 0x12e   :  { %v633_v21 = vadd.f32 0.5, %v632_v50 }
 0x139   :  { %v1763_v7 = vpop.eup %1762 }
 0x13a   :  { %v2300_v62 = vmul.f32 %v1763_v7, %v633_v21 }
 0x13c   :  { %v644_v56 = vpack.c.bf16 %v2300_v62, %v2300_v62 }
 0x13e   :  { %678 = vmatmul.mubr.bf16.vlgmr.msra.gmra.mxu0 %v644_v56  ;;  %719 = vmatmul.mubr.bf16.vlgmr.msra.gmra.mxu1 %v644_v56 }
 0x13f   :  { %756 = vmatpush1.bf16.msra.mxu0 %v1966_v4  ;;  %797 = vmatpush1.bf16.msra.mxu1 %v2108_v32 }
 0x140   :  { %757 = vmatprep.subr.bf16.mxu0 %v1976_v6  ;;  %798 = vmatprep.subr.bf16.mxu1 %v2114_v33 }
 0x141   :  { %787 = vmatprep.mubr.bf16.mxu0 %v2764_v5  ;;  %828 = vmatprep.mubr.bf16.mxu1 %v2764_v5 }
 0x143   :  { %758 = vmatpush1.bf16.msra.mxu0 %v1984_v8  ;;  %799 = vmatpush1.bf16.msra.mxu1 %v2122_v34 }
 0x144   :  { %759 = vmatprep.subr.bf16.mxu0 %v2000_v12  ;;  %800 = vmatprep.subr.bf16.mxu1 %v2129_v35 }
 0x147   :  { %760 = vmatpush1.bf16.msra.mxu0 %v2005_v13  ;;  %801 = vmatpush1.bf16.msra.mxu1 %v2137_v36 }
 0x148   :  { %761 = vmatprep.subr.bf16.mxu0 %v2010_v14  ;;  %802 = vmatprep.subr.bf16.mxu1 %v2143_v37 }
 0x14b   :  { %762 = vmatpush1.bf16.msra.mxu0 %v2018_v15  ;;  %803 = vmatpush1.bf16.msra.mxu1 %v2152_v38 }
 0x14c   :  { %763 = vmatprep.subr.bf16.mxu0 %v2025_v16  ;;  %804 = vmatprep.subr.bf16.mxu1 %v2159_v39 }
 0x14f   :  { %764 = vmatpush1.bf16.msra.mxu0 %v2033_v18  ;;  %805 = vmatpush1.bf16.msra.mxu1 %v2167_v40 }
 0x150   :  { %765 = vmatprep.subr.bf16.mxu0 %v2043_v20  ;;  %806 = vmatprep.subr.bf16.mxu1 %v2173_v41 }
 0x153   :  { %766 = vmatpush1.bf16.msra.mxu0 %v2053_v22  ;;  %807 = vmatpush1.bf16.msra.mxu1 %v2182_v42 }
 0x154   :  { %767 = vmatprep.subr.bf16.mxu0 %v2060_v23  ;;  %808 = vmatprep.subr.bf16.mxu1 %v2189_v43 }
 0x157   :  { %768 = vmatpush1.bf16.msra.mxu0 %v2075_v26  ;;  %809 = vmatpush1.bf16.msra.mxu1 %v2197_v44 }
 0x158   :  { %769 = vmatprep.subr.bf16.mxu0 %v2081_v27  ;;  %810 = vmatprep.subr.bf16.mxu1 %v2203_v45 }
 0x15b   :  { %770 = vmatpush1.bf16.msra.mxu0 %v2087_v28  ;;  %811 = vmatpush1.bf16.msra.mxu1 %v2212_v46 }
 0x15c   :  { %865 = vmatprep.subr.bf16.mxu0 %v1958_v2  ;;  %906 = vmatprep.subr.bf16.mxu1 %v2065_v24 }
 0x1fe   :  { %v679_v54 = vpop.f32.mrf.mxu0  ;;  %v720_v17 = vpop.f32.mrf.mxu1 }
 0x1ff   :  { %v727_v60 = vadd.f32 %v679_v54, %v2238_v57  ;;  %v729_v52 = vadd.f32 %v720_v17, %v2266_v47 }
 0x200   :  { %v681_v55 = vpop.f32.mrf.mxu0  ;;  %v722_v53 = vpop.f32.mrf.mxu1 }
 0x201   :  { %v731_v1 = vmul.f32 0.5, %v727_v60  ;;  %v728_v51 = vadd.f32 %v681_v55, %v2240_v59  ;;  %v730_v50 = vadd.f32 %v722_v53, %v2268_v49 }
 0x202   :  { %v683_v29 = vpop.f32.mrf.mxu0  ;;  %v724_v19 = vpop.f32.mrf.mxu1 }
 0x203   :  { %1764 = vtanh.f32 %v731_v1  ;;  %v735_v9 = vmul.f32 0.5, %v728_v51  ;;  %v740_v21 = vmul.f32 0.5, %v730_v50 }
 0x204   :  { %v684_v48 = vpop.f32.mrf.mxu0  ;;  %v725_v30 = vpop.f32.mrf.mxu1 }
 0x205   :  { %1766 = vtanh.f32 %v735_v9 }
 0x206   :  { %1768 = vtanh.f32 %v729_v52 }
 0x207   :  { %1770 = vtanh.f32 %v740_v21 }
 0x210   :  { %v1765_v7 = vpop.eup %1764 }
 0x211   :  { %v733_v57 = vmul.f32 0.5, %v1765_v7 }
 0x212   :  { %v1767_v56 = vpop.eup %1766 }
 0x213   :  { %v734_v54 = vadd.f32 0.5, %v733_v57  ;;  %v737_v60 = vmul.f32 0.5, %v1767_v56  ;;  %v1769_v59 = vpop.eup %1768 }
 0x214   :  { %v1771_v17 = vpop.eup %1770 }
 0x215   :  { %v738_v55 = vadd.f32 0.5, %v737_v60  ;;  %v745_v29 = vmul.f32 %v1769_v59, %v734_v54  ;;  %v742_v51 = vmul.f32 0.5, %v1771_v17  ;;  %v2765_v54 = vld [vmem:[#allocation17_spill] sm:$0xff] }
 0x217   :  { %v744_v1 = vmul.f32 %v738_v55, %v2297_v0  ;;  %v743_v19 = vadd.f32 0.5, %v742_v51 }
 0x219   :  { %v2343_v47 = vadd.f32 %v745_v29, %v744_v1  ;;  %v2766_v1 = vld [vmem:[#allocation18_spill] sm:$0xff] }
 0x21b   :  { %1772 = vtanh.f32 %v2343_v47 }
 0x228   :  { %v1773_v49 = vpop.eup %1772 }
 0x229   :  { %v2346_v53 = vmul.f32 %v1773_v49, %v743_v19 }
 0x22b   :  { %v754_v52 = vpack.c.bf16 %v2346_v53, %v2346_v53 }
 0x22d   :  { %788 = vmatmul.mubr.bf16.vlgmr.msra.gmra.mxu0 %v754_v52  ;;  %829 = vmatmul.mubr.bf16.vlgmr.msra.gmra.mxu1 %v754_v52 }
 0x22e   :  { %866 = vmatpush1.bf16.msra.mxu0 %v1966_v4  ;;  %907 = vmatpush1.bf16.msra.mxu1 %v2108_v32 }
 0x22f   :  { %867 = vmatprep.subr.bf16.mxu0 %v1976_v6  ;;  %908 = vmatprep.subr.bf16.mxu1 %v2114_v33 }
 0x230   :  { %897 = vmatprep.mubr.bf16.mxu0 %v2764_v5  ;;  %938 = vmatprep.mubr.bf16.mxu1 %v2764_v5 }
 0x232   :  { %868 = vmatpush1.bf16.msra.mxu0 %v1984_v8  ;;  %909 = vmatpush1.bf16.msra.mxu1 %v2122_v34 }
 0x233   :  { %869 = vmatprep.subr.bf16.mxu0 %v2000_v12  ;;  %910 = vmatprep.subr.bf16.mxu1 %v2129_v35 }
 0x236   :  { %870 = vmatpush1.bf16.msra.mxu0 %v2005_v13  ;;  %911 = vmatpush1.bf16.msra.mxu1 %v2137_v36 }
 0x237   :  { %871 = vmatprep.subr.bf16.mxu0 %v2010_v14  ;;  %912 = vmatprep.subr.bf16.mxu1 %v2143_v37 }
 0x23a   :  { %872 = vmatpush1.bf16.msra.mxu0 %v2018_v15  ;;  %913 = vmatpush1.bf16.msra.mxu1 %v2152_v38 }
 0x23b   :  { %873 = vmatprep.subr.bf16.mxu0 %v2025_v16  ;;  %914 = vmatprep.subr.bf16.mxu1 %v2159_v39 }
 0x23e   :  { %874 = vmatpush1.bf16.msra.mxu0 %v2033_v18  ;;  %915 = vmatpush1.bf16.msra.mxu1 %v2167_v40 }
 0x23f   :  { %875 = vmatprep.subr.bf16.mxu0 %v2043_v20  ;;  %916 = vmatprep.subr.bf16.mxu1 %v2173_v41 }
 0x242   :  { %876 = vmatpush1.bf16.msra.mxu0 %v2053_v22  ;;  %917 = vmatpush1.bf16.msra.mxu1 %v2182_v42 }
 0x243   :  { %877 = vmatprep.subr.bf16.mxu0 %v2060_v23  ;;  %918 = vmatprep.subr.bf16.mxu1 %v2189_v43 }
 0x246   :  { %878 = vmatpush1.bf16.msra.mxu0 %v2075_v26  ;;  %919 = vmatpush1.bf16.msra.mxu1 %v2197_v44 }
 0x247   :  { %879 = vmatprep.subr.bf16.mxu0 %v2081_v27  ;;  %920 = vmatprep.subr.bf16.mxu1 %v2203_v45 }
 0x24a   :  { %880 = vmatpush1.bf16.msra.mxu0 %v2087_v28  ;;  %921 = vmatpush1.bf16.msra.mxu1 %v2212_v46 }
 0x24b   :  { %975 = vmatprep.subr.bf16.mxu0 %v1958_v2  ;;  %1016 = vmatprep.subr.bf16.mxu1 %v2065_v24 }
 0x2ed   :  { %v789_v0 = vpop.f32.mrf.mxu0  ;;  %v830_v9 = vpop.f32.mrf.mxu1 }
 0x2ee   :  { %v837_v48 = vadd.f32 %v789_v0, %v2242_v61  ;;  %v839_v60 = vadd.f32 %v830_v9, %v2765_v54 }
 0x2ef   :  { %v791_v30 = vpop.f32.mrf.mxu0  ;;  %v832_v50 = vpop.f32.mrf.mxu1 }
 0x2f0   :  { %v841_v21 = vmul.f32 0.5, %v837_v48  ;;  %v838_v7 = vadd.f32 %v791_v30, %v2244_v63  ;;  %v840_v17 = vadd.f32 %v832_v50, %v2766_v1  ;;  %v2768_v1 = vld [vmem:[#allocation8_spill] sm:$0xff] }
 0x2f1   :  { %v793_v57 = vpop.f32.mrf.mxu0  ;;  %v834_v56 = vpop.f32.mrf.mxu1 }
 0x2f2   :  { %1774 = vtanh.f32 %v841_v21  ;;  %v845_v59 = vmul.f32 0.5, %v838_v7  ;;  %v850_v51 = vmul.f32 0.5, %v840_v17 }
 0x2f3   :  { %v794_v55 = vpop.f32.mrf.mxu0  ;;  %v835_v29 = vpop.f32.mrf.mxu1 }
 0x2f4   :  { %1776 = vtanh.f32 %v845_v59 }
 0x2f5   :  { %1778 = vtanh.f32 %v839_v60 }
 0x2f6   :  { %1780 = vtanh.f32 %v850_v51 }
 0x2ff   :  { %v1775_v19 = vpop.eup %1774 }
 0x300   :  { %v843_v61 = vmul.f32 0.5, %v1775_v19 }
 0x301   :  { %v1777_v49 = vpop.eup %1776 }
 0x302   :  { %v844_v52 = vadd.f32 0.5, %v843_v61  ;;  %v847_v0 = vmul.f32 0.5, %v1777_v49  ;;  %v1779_v63 = vpop.eup %1778  ;;  %v2769_v61 = vld [vmem:[#allocation19_spill] sm:$0xff] }
 0x303   :  { %v1781_v7 = vpop.eup %1780 }
 0x304   :  { %v848_v48 = vadd.f32 0.5, %v847_v0  ;;  %v855_v30 = vmul.f32 %v1779_v63, %v844_v52  ;;  %v852_v57 = vmul.f32 0.5, %v1781_v7 }
 0x306   :  { %v854_v21 = vmul.f32 %v848_v48, %v2343_v47  ;;  %v853_v56 = vadd.f32 0.5, %v852_v57 }
 0x308   :  { %v2389_v9 = vadd.f32 %v855_v30, %v854_v21 }
 0x30a   :  { %1782 = vtanh.f32 %v2389_v9 }
 0x317   :  { %v1783_v50 = vpop.eup %1782 }
 0x318   :  { %v2392_v54 = vmul.f32 %v1783_v50, %v853_v56 }
 0x31a   :  { %v864_v60 = vpack.c.bf16 %v2392_v54, %v2392_v54 }
 0x31c   :  { %898 = vmatmul.mubr.bf16.vlgmr.msra.gmra.mxu0 %v864_v60  ;;  %939 = vmatmul.mubr.bf16.vlgmr.msra.gmra.mxu1 %v864_v60 }
 0x31d   :  { %976 = vmatpush1.bf16.msra.mxu0 %v1966_v4  ;;  %1017 = vmatpush1.bf16.msra.mxu1 %v2108_v32 }
 0x31e   :  { %977 = vmatprep.subr.bf16.mxu0 %v1976_v6  ;;  %1018 = vmatprep.subr.bf16.mxu1 %v2114_v33 }
 0x31f   :  { %1007 = vmatprep.mubr.bf16.mxu0 %v2764_v5  ;;  %1048 = vmatprep.mubr.bf16.mxu1 %v2764_v5 }
 0x321   :  { %978 = vmatpush1.bf16.msra.mxu0 %v1984_v8  ;;  %1019 = vmatpush1.bf16.msra.mxu1 %v2122_v34  ;;  %v2767_v8 = vld [vmem:[#allocation7_spill] sm:$0xff] }
 0x322   :  { %979 = vmatprep.subr.bf16.mxu0 %v2000_v12  ;;  %1020 = vmatprep.subr.bf16.mxu1 %v2129_v35 }
 0x325   :  { %980 = vmatpush1.bf16.msra.mxu0 %v2005_v13  ;;  %1021 = vmatpush1.bf16.msra.mxu1 %v2137_v36 }
 0x326   :  { %981 = vmatprep.subr.bf16.mxu0 %v2010_v14  ;;  %1022 = vmatprep.subr.bf16.mxu1 %v2143_v37 }
 0x329   :  { %982 = vmatpush1.bf16.msra.mxu0 %v2018_v15  ;;  %1023 = vmatpush1.bf16.msra.mxu1 %v2152_v38 }
 0x32a   :  { %983 = vmatprep.subr.bf16.mxu0 %v2025_v16  ;;  %1024 = vmatprep.subr.bf16.mxu1 %v2159_v39 }
 0x32d   :  { %984 = vmatpush1.bf16.msra.mxu0 %v2033_v18  ;;  %1025 = vmatpush1.bf16.msra.mxu1 %v2167_v40 }
 0x32e   :  { %985 = vmatprep.subr.bf16.mxu0 %v2043_v20  ;;  %1026 = vmatprep.subr.bf16.mxu1 %v2173_v41 }
 0x331   :  { %986 = vmatpush1.bf16.msra.mxu0 %v2053_v22  ;;  %1027 = vmatpush1.bf16.msra.mxu1 %v2182_v42 }
 0x332   :  { %987 = vmatprep.subr.bf16.mxu0 %v2060_v23  ;;  %1028 = vmatprep.subr.bf16.mxu1 %v2189_v43 }
 0x335   :  { %988 = vmatpush1.bf16.msra.mxu0 %v2075_v26  ;;  %1029 = vmatpush1.bf16.msra.mxu1 %v2197_v44 }
 0x336   :  { %989 = vmatprep.subr.bf16.mxu0 %v2081_v27  ;;  %1030 = vmatprep.subr.bf16.mxu1 %v2203_v45 }
 0x339   :  { %990 = vmatpush1.bf16.msra.mxu0 %v2087_v28  ;;  %1031 = vmatpush1.bf16.msra.mxu1 %v2212_v46 }
 0x33a   :  { %1085 = vmatprep.subr.bf16.mxu0 %v1958_v2  ;;  %1126 = vmatprep.subr.bf16.mxu1 %v2065_v24 }
 0x3dc   :  { %v899_v4 = vpop.f32.mrf.mxu0  ;;  %v940_v6 = vpop.f32.mrf.mxu1 }
 0x3dd   :  { %v947_v47 = vadd.f32 %v899_v4, %v2767_v8  ;;  %v949_v49 = vadd.f32 %v940_v6, %v2769_v61 }
 0x3de   :  { %v901_v59 = vpop.f32.mrf.mxu0  ;;  %v942_v55 = vpop.f32.mrf.mxu1 }
 0x3df   :  { %v951_v29 = vmul.f32 0.5, %v947_v47  ;;  %v948_v17 = vadd.f32 %v901_v59, %v2768_v1  ;;  %v950_v2 = vadd.f32 %v942_v55, %v2276_v10 }
 0x3e0   :  { %v903_v51 = vpop.f32.mrf.mxu0  ;;  %v944_v19 = vpop.f32.mrf.mxu1 }
 0x3e1   :  { %1784 = vtanh.f32 %v951_v29  ;;  %v955_v52 = vmul.f32 0.5, %v948_v17  ;;  %v960_v48 = vmul.f32 0.5, %v950_v2  ;;  %v2445_v17 = vld [vmem:[%s2739_s4 + $0xe0] ss:$16 sps:$4 sm:$0xff]  }
 0x3e2   :  { %v904_v0 = vpop.f32.mrf.mxu0  ;;  %v945_v63 = vpop.f32.mrf.mxu1  ;;  %v2461_v51 = vld [vmem:[%s2739_s4 + $0xc0] ss:$16 sps:$4 sm:$0xff]  }
 0x3e3   :  { %1786 = vtanh.f32 %v955_v52 }
 0x3e4   :  { %1788 = vtanh.f32 %v949_v49 }
 0x3e5   :  { %1790 = vtanh.f32 %v960_v48 }
 0x3ee   :  { %v1785_v30 = vpop.eup %1784 }
 0x3ef   :  { %v953_v21 = vmul.f32 0.5, %v1785_v30 }
 0x3f0   :  { %v1787_v7 = vpop.eup %1786 }
 0x3f1   :  { %v954_v57 = vadd.f32 0.5, %v953_v21  ;;  %v957_v56 = vmul.f32 0.5, %v1787_v7  ;;  %v1789_v50 = vpop.eup %1788 }
 0x3f2   :  { %v1791_v47 = vpop.eup %1790 }
 0x3f3   :  { %v958_v60 = vadd.f32 0.5, %v957_v56  ;;  %v965_v4 = vmul.f32 %v1789_v50, %v954_v57  ;;  %v962_v59 = vmul.f32 0.5, %v1791_v47 }
 0x3f5   :  { %v964_v8 = vmul.f32 %v958_v60, %v2389_v9  ;;  %v963_v29 = vadd.f32 0.5, %v962_v59  ;;  %v2452_v9 = vld [vmem:[%s2739_s4 + $0xc4] ss:$16 sps:$4 sm:$0xff]  }
 0x3f7   :  { %v2435_v6 = vadd.f32 %v965_v4, %v964_v8 }
 0x3f9   :  { %1792 = vtanh.f32 %v2435_v6 }
 0x406   :  { %v1793_v10 = vpop.eup %1792 }
 0x407   :  { %v2438_v55 = vmul.f32 %v1793_v10, %v963_v29  ;;  %v2772_v10 = vld [vmem:[#allocation11_spill] sm:$0xff] }
 0x409   :  { %v974_v1 = vpack.c.bf16 %v2438_v55, %v2438_v55 }
 0x40b   :  { %1008 = vmatmul.mubr.bf16.vlgmr.msra.gmra.mxu0 %v974_v1  ;;  %1049 = vmatmul.mubr.bf16.vlgmr.msra.gmra.mxu1 %v974_v1 }
 0x40c   :  { %1086 = vmatpush1.bf16.msra.mxu0 %v2445_v17  ;;  %1127 = vmatpush1.bf16.msra.mxu1 %v2108_v32 }
 0x40d   :  { %1087 = vmatprep.subr.bf16.mxu0 %v2452_v9  ;;  %1128 = vmatprep.subr.bf16.mxu1 %v2114_v33 }
 0x40e   :  { %1117 = vmatprep.mubr.bf16.mxu0 %v2764_v5  ;;  %1158 = vmatprep.mubr.bf16.mxu1 %v2764_v5 }
 0x410   :  { %1088 = vmatpush1.bf16.msra.mxu0 %v2461_v51  ;;  %1129 = vmatpush1.bf16.msra.mxu1 %v2122_v34 }
 0x411   :  { %1089 = vmatprep.subr.bf16.mxu0 %v2000_v12  ;;  %1130 = vmatprep.subr.bf16.mxu1 %v2129_v35  ;;  %v2492_v12 = vld [vmem:[%s2739_s4 + $0xe4] ss:$16 sps:$4 sm:$0xff]  }
 0x414   :  { %1090 = vmatpush1.bf16.msra.mxu0 %v2005_v13  ;;  %1131 = vmatpush1.bf16.msra.mxu1 %v2137_v36 }
 0x415   :  { %1091 = vmatprep.subr.bf16.mxu0 %v2010_v14  ;;  %1132 = vmatprep.subr.bf16.mxu1 %v2143_v37 }
 0x418   :  { %1092 = vmatpush1.bf16.msra.mxu0 %v2018_v15  ;;  %1133 = vmatpush1.bf16.msra.mxu1 %v2152_v38  ;;  %v2770_v15 = vld [vmem:[#allocation9_spill] sm:$0xff] }
 0x419   :  { %1093 = vmatprep.subr.bf16.mxu0 %v2025_v16  ;;  %1134 = vmatprep.subr.bf16.mxu1 %v2159_v39 }
 0x41c   :  { %1094 = vmatpush1.bf16.msra.mxu0 %v2033_v18  ;;  %1135 = vmatpush1.bf16.msra.mxu1 %v2167_v40 }
 0x41d   :  { %1095 = vmatprep.subr.bf16.mxu0 %v2043_v20  ;;  %1136 = vmatprep.subr.bf16.mxu1 %v2173_v41 }
 0x420   :  { %1096 = vmatpush1.bf16.msra.mxu0 %v2053_v22  ;;  %1137 = vmatpush1.bf16.msra.mxu1 %v2182_v42 }
 0x421   :  { %1097 = vmatprep.subr.bf16.mxu0 %v2060_v23  ;;  %1138 = vmatprep.subr.bf16.mxu1 %v2189_v43  ;;  %v2771_v23 = vld [vmem:[#allocation10_spill] sm:$0xff] }
 0x424   :  { %1098 = vmatpush1.bf16.msra.mxu0 %v2075_v26  ;;  %1139 = vmatpush1.bf16.msra.mxu1 %v2197_v44 }
 0x425   :  { %1099 = vmatprep.subr.bf16.mxu0 %v2081_v27  ;;  %1140 = vmatprep.subr.bf16.mxu1 %v2203_v45 }
 0x428   :  { %1100 = vmatpush1.bf16.msra.mxu0 %v2087_v28  ;;  %1141 = vmatpush1.bf16.msra.mxu1 %v2212_v46 }
 0x429   :  { %1195 = vmatprep.subr.bf16.mxu0 %v2492_v12  ;;  %1236 = vmatprep.subr.bf16.mxu1 %v2065_v24 }
 0x4cb   :  { %v1009_v13 = vpop.f32.mrf.mxu0  ;;  %v1050_v14 = vpop.f32.mrf.mxu1 }
 0x4cc   :  { %v1057_v16 = vadd.f32 %v1009_v13, %v2770_v15  ;;  %v1059_v19 = vadd.f32 %v1050_v14, %v2278_v25  ;;  %v2773_v15 = vld [vmem:[#allocation12_spill] sm:$0xff] }
 0x4cd   :  { %v1011_v18 = vpop.f32.mrf.mxu0  ;;  %v1052_v20 = vpop.f32.mrf.mxu1 }
 0x4ce   :  { %v1061_v22 = vmul.f32 0.5, %v1057_v16  ;;  %v1058_v26 = vadd.f32 %v1011_v18, %v2771_v23  ;;  %v1060_v24 = vadd.f32 %v1052_v20, %v2280_v3 }
 0x4cf   :  { %v1013_v27 = vpop.f32.mrf.mxu0  ;;  %v1054_v28 = vpop.f32.mrf.mxu1 }
 0x4d0   :  { %1794 = vtanh.f32 %v1061_v22  ;;  %v1065_v61 = vmul.f32 0.5, %v1058_v26  ;;  %v1070_v0 = vmul.f32 0.5, %v1060_v24  ;;  %v2774_v26 = vld [vmem:[#allocation20_spill] sm:$0xff] }
 0x4d1   :  { %v1014_v49 = vpop.f32.mrf.mxu0  ;;  %v1055_v52 = vpop.f32.mrf.mxu1 }
 0x4d2   :  { %1796 = vtanh.f32 %v1065_v61 }
 0x4d3   :  { %1798 = vtanh.f32 %v1059_v19 }
 0x4d4   :  { %1800 = vtanh.f32 %v1070_v0 }
 0x4dd   :  { %v1795_v63 = vpop.eup %1794 }
 0x4de   :  { %v1063_v2 = vmul.f32 0.5, %v1795_v63 }
 0x4df   :  { %v1797_v48 = vpop.eup %1796 }
 0x4e0   :  { %v1064_v30 = vadd.f32 0.5, %v1063_v2  ;;  %v1067_v21 = vmul.f32 0.5, %v1797_v48  ;;  %v1799_v7 = vpop.eup %1798 }
 0x4e1   :  { %v1801_v60 = vpop.eup %1800 }
 0x4e2   :  { %v1068_v57 = vadd.f32 0.5, %v1067_v21  ;;  %v1075_v56 = vmul.f32 %v1799_v7, %v1064_v30  ;;  %v1072_v4 = vmul.f32 0.5, %v1801_v60  ;;  %v1852_v60 = vld [vmem:[%s2739_s4 + $0xcc] ss:$16 sps:$4 sm:$0xff]  }
 0x4e4   :  { %v1074_v50 = vmul.f32 %v1068_v57, %v2435_v6  ;;  %v1073_v8 = vadd.f32 0.5, %v1072_v4  ;;  %v2519_v6 = vld [vmem:[%s2739_s4 + $0xa4] ss:$16 sps:$4 sm:$0xff]   ;;  %v1857_v4 = vld [vmem:[%s2739_s4 + $0x88] ss:$16 sps:$4 sm:$0xff]  }
 0x4e6   :  { %v2501_v25 = vadd.f32 %v1075_v56, %v1074_v50 }
 0x4e8   :  { %1802 = vtanh.f32 %v2501_v25 }
 0x4f5   :  { %v1803_v3 = vpop.eup %1802 }
 0x4f6   :  { %v2504_v47 = vmul.f32 %v1803_v3, %v1073_v8  ;;  %v1858_v8 = vld [vmem:[%s2739_s4 + $0x6c] ss:$16 sps:$4 sm:$0xff]   ;;  %v1859_v3 = vld [vmem:[%s2739_s4 + $0x68] ss:$16 sps:$4 sm:$0xff]  }
 0x4f8   :  { %v1084_v59 = vpack.c.bf16 %v2504_v47, %v2504_v47 }
 0x4fa   :  { %1118 = vmatmul.mubr.bf16.vlgmr.msra.gmra.mxu0 %v1084_v59  ;;  %1159 = vmatmul.mubr.bf16.vlgmr.msra.gmra.mxu1 %v1084_v59  ;;  %v1860_v59 = vld [vmem:[%s2739_s4 + $0x4c] ss:$16 sps:$4 sm:$0xff]  }
 0x4fb   :  { %1196 = vmatpush1.bf16.msra.mxu0 %v2445_v17  ;;  %1237 = vmatpush1.bf16.msra.mxu1 %v2108_v32  ;;  %v2526_v32 = vld [vmem:[%s2739_s4 + $0xa0] ss:$16 sps:$4 sm:$0xff]  }
 0x4fc   :  { %1197 = vmatprep.subr.bf16.mxu0 %v2452_v9  ;;  %1238 = vmatprep.subr.bf16.mxu1 %v2114_v33  ;;  %v2533_v33 = vld [vmem:[%s2739_s4 + $0x84] ss:$16 sps:$4 sm:$0xff]  }
 0x4fd   :  { %1227 = vmatprep.mubr.bf16.mxu0 %v2764_v5  ;;  %1268 = vmatprep.mubr.bf16.mxu1 %v2764_v5 }
 0x4ff   :  { %1198 = vmatpush1.bf16.msra.mxu0 %v2461_v51  ;;  %1239 = vmatpush1.bf16.msra.mxu1 %v2122_v34  ;;  %v2540_v34 = vld [vmem:[%s2739_s4 + $0x80] ss:$16 sps:$4 sm:$0xff]  }
 0x500   :  { %1199 = vmatprep.subr.bf16.mxu0 %v2519_v6  ;;  %1240 = vmatprep.subr.bf16.mxu1 %v2129_v35  ;;  %v2547_v35 = vld [vmem:[%s2739_s4 + $0x64] ss:$16 sps:$4 sm:$0xff]  }
 0x503   :  { %1200 = vmatpush1.bf16.msra.mxu0 %v2526_v32  ;;  %1241 = vmatpush1.bf16.msra.mxu1 %v2137_v36  ;;  %v2554_v36 = vld [vmem:[%s2739_s4 + $0x60] ss:$16 sps:$4 sm:$0xff]  }
 0x504   :  { %1201 = vmatprep.subr.bf16.mxu0 %v2533_v33  ;;  %1242 = vmatprep.subr.bf16.mxu1 %v2143_v37  ;;  %v2561_v37 = vld [vmem:[%s2739_s4 + $0x44] ss:$16 sps:$4 sm:$0xff]  }
 0x507   :  { %1202 = vmatpush1.bf16.msra.mxu0 %v2540_v34  ;;  %1243 = vmatpush1.bf16.msra.mxu1 %v2152_v38  ;;  %v2568_v38 = vld [vmem:[%s2739_s4 + $0x40] ss:$16 sps:$4 sm:$0xff]  }
 0x508   :  { %1203 = vmatprep.subr.bf16.mxu0 %v2547_v35  ;;  %1244 = vmatprep.subr.bf16.mxu1 %v2159_v39  ;;  %v2575_v39 = vld [vmem:[%s2739_s4 + $0x24] ss:$16 sps:$4 sm:$0xff]  }
 0x50b   :  { %1204 = vmatpush1.bf16.msra.mxu0 %v2554_v36  ;;  %1245 = vmatpush1.bf16.msra.mxu1 %v2167_v40  ;;  %v2582_v40 = vld [vmem:[%s2739_s4 + $0x20] ss:$16 sps:$4 sm:$0xff]  }
 0x50c   :  { %1205 = vmatprep.subr.bf16.mxu0 %v2561_v37  ;;  %1246 = vmatprep.subr.bf16.mxu1 %v2173_v41  ;;  %v2589_v41 = vld [vmem:[%s2739_s4 + $0x4] ss:$16 sps:$4 sm:$0xff]  }
 0x50f   :  { %1206 = vmatpush1.bf16.msra.mxu0 %v2568_v38  ;;  %1247 = vmatpush1.bf16.msra.mxu1 %v2182_v42  ;;  %v2596_v42 = vld [vmem:[%s2739_s4] ss:$16 sps:$4 sm:$0xff]  }
 0x510   :  { %1207 = vmatprep.subr.bf16.mxu0 %v2575_v39  ;;  %1248 = vmatprep.subr.bf16.mxu1 %v2189_v43  ;;  %v1850_v43 = vld [vmem:[%s2739_s4 + $0xec] ss:$16 sps:$4 sm:$0xff]  }
 0x513   :  { %1208 = vmatpush1.bf16.msra.mxu0 %v2582_v40  ;;  %1249 = vmatpush1.bf16.msra.mxu1 %v2197_v44 }
 0x514   :  { %1209 = vmatprep.subr.bf16.mxu0 %v2589_v41  ;;  %1250 = vmatprep.subr.bf16.mxu1 %v2203_v45 }
 0x517   :  { %1210 = vmatpush1.bf16.msra.mxu0 %v2596_v42  ;;  %1251 = vmatpush1.bf16.msra.mxu1 %v2212_v46 }
 0x518   :  { %1305 = vmatprep.subr.bf16.mxu0 %v2492_v12  ;;  %1346 = vmatprep.subr.bf16.mxu1 %v1850_v43 }
 0x5ba   :  { %v1119_v44 = vpop.f32.mrf.mxu0  ;;  %v1160_v29 = vpop.f32.mrf.mxu1 }
 0x5bb   :  { %v1167_v45 = vadd.f32 %v1119_v44, %v2772_v10  ;;  %v1169_v46 = vadd.f32 %v1160_v29, %v2282_v58  ;;  %v2776_v29 = vld [vmem:[#allocation14_spill] sm:$0xff] }
 0x5bc   :  { %v1121_v1 = vpop.f32.mrf.mxu0  ;;  %v1162_v13 = vpop.f32.mrf.mxu1 }
 0x5bd   :  { %v1171_v14 = vmul.f32 0.5, %v1167_v45  ;;  %v1168_v16 = vadd.f32 %v1121_v1, %v2773_v15  ;;  %v1170_v27 = vadd.f32 %v1162_v13, %v2774_v26 }
 0x5be   :  { %v1123_v18 = vpop.f32.mrf.mxu0  ;;  %v1164_v20 = vpop.f32.mrf.mxu1 }
 0x5bf   :  { %1804 = vtanh.f32 %v1171_v14  ;;  %v1175_v12 = vmul.f32 0.5, %v1168_v16  ;;  %v1180_v28 = vmul.f32 0.5, %v1170_v27  ;;  %v2778_v18 = vld [vmem:[#allocation22_spill] sm:$0xff] }
 0x5c0   :  { %v1124_v22 = vpop.f32.mrf.mxu0  ;;  %v1165_v23 = vpop.f32.mrf.mxu1 }
 0x5c1   :  { %1806 = vtanh.f32 %v1175_v12 }
 0x5c2   :  { %1808 = vtanh.f32 %v1169_v46 }
 0x5c3   :  { %1810 = vtanh.f32 %v1180_v28 }
 0x5cc   :  { %v1805_v19 = vpop.eup %1804 }
 0x5cd   :  { %v1173_v61 = vmul.f32 0.5, %v1805_v19 }
 0x5ce   :  { %v1807_v49 = vpop.eup %1806 }
 0x5cf   :  { %v1174_v52 = vadd.f32 0.5, %v1173_v61  ;;  %v1177_v24 = vmul.f32 0.5, %v1807_v49  ;;  %v1809_v0 = vpop.eup %1808 }
 0x5d0   :  { %v1811_v30 = vpop.eup %1810 }
 0x5d1   :  { %v1178_v63 = vadd.f32 0.5, %v1177_v24  ;;  %v1185_v2 = vmul.f32 %v1809_v0, %v1174_v52  ;;  %v1182_v21 = vmul.f32 0.5, %v1811_v30 }
 0x5d3   :  { %v1184_v48 = vmul.f32 %v1178_v63, %v2501_v25  ;;  %v1183_v7 = vadd.f32 0.5, %v1182_v21  ;;  %v1851_v25 = vld [vmem:[%s2739_s4 + $0xe8] ss:$16 sps:$4 sm:$0xff]   ;;  %v1747_v21 = vld [vmem:[#allocation4 + $0x30] sm:$0xff]  }
 0x5d5   :  { %v2609_v58 = vadd.f32 %v1185_v2, %v1184_v48 }
 0x5d7   :  { %1812 = vtanh.f32 %v2609_v58 }
 0x5e4   :  { %v1813_v57 = vpop.eup %1812 }
 0x5e5   :  { %v2612_v56 = vmul.f32 %v1813_v57, %v1183_v7  ;;  %v1418_v7 = vpack.c.bf16 %v2346_v53, %v2300_v62  ;;  %v1749_v57 = vld [vmem:[#allocation4 + $0x20] sm:$0xff]   ;;  %v1419_v53 = vpack.c.bf16 %v2438_v55, %v2392_v54 }
 0x5e6   :  { %v1753_v62 = vld [vmem:[#allocation4] sm:$0xff]  }
 0x5e7   :  { %v1194_v50 = vpack.c.bf16 %v2612_v56, %v2612_v56 }
 0x5e9   :  { %1228 = vmatmul.mubr.bf16.vlgmr.msra.gmra.mxu0 %v1194_v50  ;;  %1269 = vmatmul.mubr.bf16.vlgmr.msra.gmra.mxu1 %v1194_v50  ;;  %v1750_v50 = vld [vmem:[#allocation4 + $0x18] sm:$0xff]  }
 0x5ea   :  { %1306 = vmatpush1.bf16.msra.mxu0 %v2445_v17  ;;  %1347 = vmatpush1.bf16.msra.mxu1 %v1851_v25  ;;  %v1853_v17 = vld [vmem:[%s2739_s4 + $0xc8] ss:$16 sps:$4 sm:$0xff]   ;;  %v1751_v25 = vld [vmem:[#allocation4 + $0x10] sm:$0xff]  }
 0x5eb   :  { %1307 = vmatprep.subr.bf16.mxu0 %v2452_v9  ;;  %1348 = vmatprep.subr.bf16.mxu1 %v1852_v60  ;;  %v1854_v9 = vld [vmem:[%s2739_s4 + $0xac] ss:$16 sps:$4 sm:$0xff]  }
 0x5ec   :  { %1337 = vmatprep.mubr.bf16.mxu0 %v2764_v5  ;;  %1378 = vmatprep.mubr.bf16.mxu1 %v2764_v5  ;;  %v1855_v5 = vld [vmem:[%s2739_s4 + $0xa8] ss:$16 sps:$4 sm:$0xff]  }
 0x5ed   :  { %v1752_v60 = vld [vmem:[#allocation4 + $0x8] sm:$0xff]  }
 0x5ee   :  { %1308 = vmatpush1.bf16.msra.mxu0 %v2461_v51  ;;  %1349 = vmatpush1.bf16.msra.mxu1 %v1853_v17  ;;  %v1856_v51 = vld [vmem:[%s2739_s4 + $0x8c] ss:$16 sps:$4 sm:$0xff]   ;;  %v1420_v17 = vpack.c.bf16 %v2612_v56, %v2504_v47 }
 0x5ef   :  { %1309 = vmatprep.subr.bf16.mxu0 %v2519_v6  ;;  %1350 = vmatprep.subr.bf16.mxu1 %v1854_v9  ;;  %v1861_v6 = vld [vmem:[%s2739_s4 + $0x48] ss:$16 sps:$4 sm:$0xff]  }
 0x5f2   :  { %1310 = vmatpush1.bf16.msra.mxu0 %v2526_v32  ;;  %1351 = vmatpush1.bf16.msra.mxu1 %v1855_v5  ;;  %v1862_v32 = vld [vmem:[%s2739_s4 + $0x2c] ss:$16 sps:$4 sm:$0xff]  }
 0x5f3   :  { %1311 = vmatprep.subr.bf16.mxu0 %v2533_v33  ;;  %1352 = vmatprep.subr.bf16.mxu1 %v1856_v51  ;;  %v1863_v33 = vld [vmem:[%s2739_s4 + $0x28] ss:$16 sps:$4 sm:$0xff]   ;;  %v2779_v51 = vld [vmem:[#allocation15_spill] sm:$0xff] }
 0x5f6   :  { %1312 = vmatpush1.bf16.msra.mxu0 %v2540_v34  ;;  %1353 = vmatpush1.bf16.msra.mxu1 %v1857_v4  ;;  %v1864_v34 = vld [vmem:[%s2739_s4 + $0xc] ss:$16 sps:$4 sm:$0xff]  }
 0x5f7   :  { %1313 = vmatprep.subr.bf16.mxu0 %v2547_v35  ;;  %1354 = vmatprep.subr.bf16.mxu1 %v1858_v8  ;;  %v1865_v35 = vld [vmem:[%s2739_s4 + $0x8] ss:$16 sps:$4 sm:$0xff]  }
 0x5fa   :  { %1314 = vmatpush1.bf16.msra.mxu0 %v2554_v36  ;;  %1355 = vmatpush1.bf16.msra.mxu1 %v1859_v3  ;;  %v1746_v36 = vld [vmem:[#allocation4 + $0x38] sm:$0xff]  }
 0x5fb   :  { %1315 = vmatprep.subr.bf16.mxu0 %v2561_v37  ;;  %1356 = vmatprep.subr.bf16.mxu1 %v1860_v59 }
 0x5fe   :  { %1316 = vmatpush1.bf16.msra.mxu0 %v2568_v38  ;;  %1357 = vmatpush1.bf16.msra.mxu1 %v1861_v6  ;;  %v2780_v6 = vld [vmem:[#allocation16_spill] sm:$0xff] }
 0x5ff   :  { %1317 = vmatprep.subr.bf16.mxu0 %v2575_v39  ;;  %1358 = vmatprep.subr.bf16.mxu1 %v1862_v32  ;;  %v2775_v39 = vld [vmem:[#allocation13_spill] sm:$0xff] }
 0x602   :  { %1318 = vmatpush1.bf16.msra.mxu0 %v2582_v40  ;;  %1359 = vmatpush1.bf16.msra.mxu1 %v1863_v33 }
 0x603   :  { %1319 = vmatprep.subr.bf16.mxu0 %v2589_v41  ;;  %1360 = vmatprep.subr.bf16.mxu1 %v1864_v34 }
 0x606   :  { %1320 = vmatpush1.bf16.msra.mxu0 %v2596_v42  ;;  %1361 = vmatpush1.bf16.msra.mxu1 %v1865_v35  ;;  %v2777_v42 = vld [vmem:[#allocation21_spill] sm:$0xff] }
 0x607   :  { %1654 = vmatprep.subr.bf16.mxu0 %v1746_v36 }
 0x6a9   :  { %v1229_v37 = vpop.f32.mrf.mxu0  ;;  %v1270_v38 = vpop.f32.mrf.mxu1 }
 0x6aa   :  { %v1277_v40 = vadd.f32 %v1229_v37, %v2775_v39  ;;  %v1279_v13 = vadd.f32 %v1270_v38, %v2777_v42 }
 0x6ab   :  { %v1231_v43 = vpop.f32.mrf.mxu0  ;;  %v1272_v41 = vpop.f32.mrf.mxu1 }
 0x6ac   :  { %v1281_v44 = vmul.f32 0.5, %v1277_v40  ;;  %v1278_v10 = vadd.f32 %v1231_v43, %v2776_v29  ;;  %v1280_v20 = vadd.f32 %v1272_v41, %v2778_v18 }
 0x6ad   :  { %v1233_v45 = vpop.f32.mrf.mxu0  ;;  %v1274_v1 = vpop.f32.mrf.mxu1 }
 0x6ae   :  { %1814 = vtanh.f32 %v1281_v44  ;;  %v1285_v14 = vmul.f32 0.5, %v1278_v10  ;;  %v1290_v46 = vmul.f32 0.5, %v1280_v20 }
 0x6af   :  { %v1234_v15 = vpop.f32.mrf.mxu0  ;;  %v1275_v16 = vpop.f32.mrf.mxu1 }
 0x6b0   :  { %1816 = vtanh.f32 %v1285_v14 }
 0x6b1   :  { %1818 = vtanh.f32 %v1279_v13 }
 0x6b2   :  { %1820 = vtanh.f32 %v1290_v46 }
 0x6bb   :  { %v1815_v12 = vpop.eup %1814 }
 0x6bc   :  { %v1283_v22 = vmul.f32 0.5, %v1815_v12 }
 0x6bd   :  { %v1817_v23 = vpop.eup %1816 }
 0x6be   :  { %v1284_v26 = vadd.f32 0.5, %v1283_v22  ;;  %v1287_v27 = vmul.f32 0.5, %v1817_v23  ;;  %v1819_v28 = vpop.eup %1818 }
 0x6bf   :  { %v1821_v24 = vpop.eup %1820 }
 0x6c0   :  { %v1288_v19 = vadd.f32 0.5, %v1287_v27  ;;  %v1295_v61 = vmul.f32 %v1819_v28, %v1284_v26  ;;  %v1292_v0 = vmul.f32 0.5, %v1821_v24 }
 0x6c2   :  { %v1294_v49 = vmul.f32 %v1288_v19, %v2609_v58  ;;  %v1293_v63 = vadd.f32 0.5, %v1292_v0  ;;  %v1748_v58 = vld [vmem:[#allocation4 + $0x28] sm:$0xff]  }
 0x6c4   :  { %v2683_v52 = vadd.f32 %v1295_v61, %v1294_v49 }
 0x6c6   :  { %1822 = vtanh.f32 %v2683_v52 }
 0x6d3   :  { %v1823_v2 = vpop.eup %1822 }
 0x6d4   :  { %v2686_v48 = vmul.f32 %v1823_v2, %v1293_v63 }
 0x6d6   :  { %v1304_v30 = vpack.c.bf16 %v2686_v48, %v2686_v48 }
 0x6d8   :  { %1338 = vmatmul.mubr.bf16.vlgmr.msra.gmra.mxu0 %v1304_v30  ;;  %1379 = vmatmul.mubr.bf16.vlgmr.msra.gmra.mxu1 %v1304_v30 }
 0x6d9   :  { %1655 = vmatpush3.bf16.msra.mxu0 %v1746_v36  ;;  %1670 = vmatprep.mubr.bf16.mxu0 %v1418_v7 }
 0x6da   :  { %1656 = vmatprep.subr.bf16.mxu0 %v1747_v21 }
 0x6dd   :  { %1657 = vmatpush3.bf16.msra.mxu0 %v1747_v21 }
 0x6de   :  { %1658 = vmatprep.subr.bf16.mxu0 %v1748_v58 }
 0x6e1   :  { %1659 = vmatpush3.bf16.msra.mxu0 %v1748_v58 }
 0x6e2   :  { %1660 = vmatprep.subr.bf16.mxu0 %v1749_v57 }
 0x6e5   :  { %1661 = vmatpush3.bf16.msra.mxu0 %v1749_v57 }
 0x6e6   :  { %1662 = vmatprep.subr.bf16.mxu0 %v1750_v50 }
 0x6e9   :  { %1663 = vmatpush3.bf16.msra.mxu0 %v1750_v50 }
 0x6ea   :  { %1664 = vmatprep.subr.bf16.mxu0 %v1751_v25 }
 0x6ed   :  { %1665 = vmatpush3.bf16.msra.mxu0 %v1751_v25 }
 0x6ee   :  { %1666 = vmatprep.subr.bf16.mxu0 %v1752_v60 }
 0x6f1   :  { %1667 = vmatpush3.bf16.msra.mxu0 %v1752_v60 }
 0x6f2   :  { %1668 = vmatprep.subr.bf16.mxu0 %v1753_v62 }
 0x6f5   :  { %1669 = vmatpush3.bf16.msra.mxu0 %v1753_v62 }
 0x6f8   :  { %1671 = vmatmul.mubr.bf16.vlgmr.msra.gmra.mxu0 %v1419_v53 }
 0x6f9   :  { %1674 = vmatprep.mubr.bf16.mxu0 %v1420_v17 }
 0x798   :  { %v1339_v9 = vpop.f32.mrf.mxu0  ;;  %v1380_v5 = vpop.f32.mrf.mxu1 }
 0x799   :  { %v1387_v4 = vadd.f32 %v1339_v9, %v2779_v51  ;;  %v1389_v35 = vadd.f32 %v1380_v5, %v2290_v31 }
 0x79a   :  { %v1341_v8 = vpop.f32.mrf.mxu0  ;;  %v1382_v3 = vpop.f32.mrf.mxu1 }
 0x79b   :  { %v1391_v59 = vmul.f32 0.5, %v1387_v4  ;;  %v1388_v32 = vadd.f32 %v1341_v8, %v2780_v6  ;;  %v1390_v47 = vadd.f32 %v1382_v3, %v2292_v11  ;;  %v1633_v11 = vld [vmem:[%s2742_s7] ss:$0 sm:$0xff] }
 0x79c   :  { %v1343_v33 = vpop.f32.mrf.mxu0  ;;  %v1384_v34 = vpop.f32.mrf.mxu1 }
 0x79d   :  { %1824 = vtanh.f32 %v1391_v59  ;;  %v1395_v54 = vmul.f32 0.5, %v1388_v32  ;;  %v1400_v56 = vmul.f32 0.5, %v1390_v47 }
 0x79e   :  { %v1344_v55 = vpop.f32.mrf.mxu0  ;;  %v1385_v36 = vpop.f32.mrf.mxu1 }
 0x79f   :  { %1826 = vtanh.f32 %v1395_v54 }
 0x7a0   :  { %1828 = vtanh.f32 %v1389_v35 }
 0x7a1   :  { %1830 = vtanh.f32 %v1400_v56 }
 0x7aa   :  { %v1825_v37 = vpop.eup %1824 }
 0x7ab   :  { %v1393_v38 = vmul.f32 0.5, %v1825_v37 }
 0x7ac   :  { %v1827_v39 = vpop.eup %1826 }
 0x7ad   :  { %v1394_v40 = vadd.f32 0.5, %v1393_v38  ;;  %v1397_v43 = vmul.f32 0.5, %v1827_v39  ;;  %v1829_v41 = vpop.eup %1828 }
 0x7ae   :  { %v1831_v42 = vpop.eup %1830 }
 0x7af   :  { %v1398_v44 = vadd.f32 0.5, %v1397_v43  ;;  %v1405_v29 = vmul.f32 %v1829_v41, %v1394_v40  ;;  %v1402_v16 = vmul.f32 0.5, %v1831_v42 }
 0x7b1   :  { %v1404_v10 = vmul.f32 %v1398_v44, %v2683_v52  ;;  %v1403_v12 = vadd.f32 0.5, %v1402_v16 }
 0x7b3   :  { %v1406_v31 = vadd.f32 %v1405_v29, %v1404_v10 }
 0x7b5   :  { %1832 = vtanh.f32 %v1406_v31  ;;  %1567 = vst [vmem:[%s2745_s10] sm:$0xff] %v1406_v31 }
 0x7b8   :  { %v1672_v45 = vpop.f32.mrf.mxu0 }
 0x7b9   :  { %v1536_v1 = vadd.f32 %v1672_v45, %v1633_v11 }
 0x7ba   :  { %v1527_v13 = vpop.f32.mrf.mxu0 }
 0x7bb   :  { %1560 = vst [vmem:[%s2743_s8 + $0x10] sm:$0xff] %v1536_v1  ;;  %v1528_v14 = vadd.f32 %v1633_v11, %v1527_v13 }
 0x7bc   :  { %v1673_v15 = vpop.f32.mrf.mxu0 }
 0x7bd   :  { %1558 = vst [vmem:[%s2743_s8] sm:$0xff] %v1528_v14  ;;  %v1539_v18 = vadd.f32 %v1673_v15, %v1633_v11 }
 0x7be   :  { %v1530_v20 = vpop.f32.mrf.mxu0 }
 0x7bf   :  { %1561 = vst [vmem:[%s2743_s8 + $0x18] sm:$0xff] %v1539_v18  ;;  %v1531_v46 = vadd.f32 %v1633_v11, %v1530_v20 }
 0x7c1   :  { %1559 = vst [vmem:[%s2743_s8 + $0x8] sm:$0xff] %v1531_v46 }
 0x7c2   :  { %v1833_v22 = vpop.eup %1832 }
 0x7c3   :  { %v1408_v23 = vmul.f32 %v1833_v22, %v1403_v12 }
 0x7c5   :  { %v1421_v26 = vpack.c.bf16 %v1408_v23, %v2686_v48  ;;  %1566 = vst [vmem:[%s2744_s9] sm:$0xff] %v1408_v23 }
 0x7c7   :  { %1675 = vmatmul.mubr.bf16.gmra.mxu0 %v1421_v26 }
 0x887   :  { %v1676_v27 = vpop.f32.mrf.mxu0 }
 0x888   :  { %v1552_v28 = vadd.f32 %v1676_v27, %v1633_v11 }
 0x889   :  { %v1543_v19 = vpop.f32.mrf.mxu0 }
 0x88a   :  { %1564 = vst [vmem:[%s2743_s8 + $0x30] sm:$0xff] %v1552_v28  ;;  %v1544_v61 = vadd.f32 %v1633_v11, %v1543_v19 }
 0x88b   :  { %v1677_v49 = vpop.f32.mrf.mxu0 }
 0x88c   :  { %1562 = vst [vmem:[%s2743_s8 + $0x20] sm:$0xff] %v1544_v61  ;;  %v1555_v52 = vadd.f32 %v1677_v49, %v1633_v11 }
 0x88d   :  { %v1546_v24 = vpop.f32.mrf.mxu0 }
 0x88e   :  { %1565 = vst [vmem:[%s2743_s8 + $0x38] sm:$0xff] %v1555_v52  ;;  %v1547_v0 = vadd.f32 %v1633_v11, %v1546_v24 }
 0x890   :  { %1563 = vst [vmem:[%s2743_s8 + $0x28] sm:$0xff] %v1547_v0 }
 0x891   :  { %1580 = vsyncpa [#allocation5], 1 }

</bundles_post_ra>
